<compile_context>
chip_gen: v5e
topology: v5e:2x2
jax: 0.10.0
libtpu: 0.0.40
codegen_flags: <defaults>
</compile_context>

<pallas_src>
import functools

import jax
import jax.numpy as jnp
from jax.experimental import pallas as pl
from jax.experimental.pallas import tpu as pltpu

# ---- static configuration (small, consistent with the module) --------------
B = 2            # batch
L = 16           # time steps
C_IN = 24        # in_channels
C_OUT = 32       # out_channels
SCALE = 4        # res2net_scale
H = C_OUT // SCALE            # 8
SE_CH = 16       # se_channels
K = 3            # res2net kernel_size (odd, as required by _Conv1d)
DIL = 2          # res2net dilation
PAD = DIL * (K - 1) // 2      # 'same' padding per side (stride=1, odd kernel) = 2
EPS = 1e-5
BL = B * L                    # 32 (flattened batch*time rows)

# ---- weight slab layout (bf16, (112, 64)); row starts are multiples of 16 ---
W_ROWS, W_COLS = 112, 64
R_FRONT = 0     # rows 0:C_IN      cols 0:2*C_OUT              = [wsc | w1]
R_W2 = 32       # rows 32:64       cols 0:C_OUT = w2, cols C_OUT:C_OUT+SE_CH = wse1
R_WSE2 = 64     # rows 64:80       cols 0:C_OUT                = wse2
R_RES = 80      # rows 80:80+K*H   cols j*H:(j+1)*H            = res2net branch j (K*H, H)

# ---- bias / BN slab layout (f32, (8, 64)) -----------------------------------
V_ROWS, V_COLS = 8, 64
# row 0: [bsc | b1]      row 1: [bn1_scale | bn1_shift]
# row 2: [b2  | bn2_scale]   row 3: [bn2_shift | bse1 (16) | pad]
# row 4: [bse2 | pad]        rows 5..7: branch j: [br | bnr_scale | bnr_shift | pad]


# ---- pltpu.roll rotation-convention probe -----------------------------------
_ROLL_MODE = None   # "np": roll(z,k)[r]==z[(r-k)%n]; "rev": ==z[(r+k)%n]; "concat": fallback


def _probe_roll_mode():
    """Pin pltpu.roll's rotation convention on this device once (robust across
    jax versions); fall back to slice+concat rolls if the op misbehaves."""
    global _ROLL_MODE
    if _ROLL_MODE is not None:
        return _ROLL_MODE
    try:
        def k(x_ref, o_ref):
            o_ref[...] = pltpu.roll(x_ref[...], 2, axis=0)

        xin = (jnp.arange(BL * H, dtype=jnp.float32) + 1.0).reshape(BL, H)
        out = pl.pallas_call(
            k, out_shape=jax.ShapeDtypeStruct((BL, H), jnp.float32))(xin)
        out_h = jax.device_get(out)
        xin_h = jax.device_get(xin)
        if out_h[2, 0] == xin_h[0, 0]:
            _ROLL_MODE = "np"
        elif out_h[0, 0] == xin_h[2, 0]:
            _ROLL_MODE = "rev"
        else:
            _ROLL_MODE = "concat"
    except Exception:  # pragma: no cover - conservative fallback
        _ROLL_MODE = "concat"
    return _ROLL_MODE


# ---- in-kernel helpers -------------------------------------------------------
def _row_shift(z, s, cache, mode):
    """Return v with v[r] = z[(r + s) % n] along the row (sublane) axis."""
    n = z.shape[0]
    k = s % n
    if k == 0:
        return z
    if k not in cache:
        if mode == "np":
            cache[k] = pltpu.roll(z, (n - k) % n, axis=0)
        elif mode == "rev":
            cache[k] = pltpu.roll(z, k, axis=0)
        else:  # correct slice+concat fallback (slightly more relayout work)
            cache[k] = jnp.concatenate([z[k:, :], z[:k, :]], axis=0)
    return cache[k]


def _tap_views(z, local_r, mode):
    """K dilated-tap views of z with per-segment reflect ('same') padding.

    view_t[r] = z_seg[reflect(local_r + t*DIL - PAD)] for each length-L segment
    of the flattened (B*L, H) array. Built from 2 sublane rolls + row-masked
    selects; requires PAD < L (holds for L=16, PAD=2).
    """
    cache = {}
    views = []
    for t in range(K):
        d = t * DIL - PAD
        v = _row_shift(z, d, cache, mode)
        if d < 0:                       # head reflect: local rows [0, -d)
            for lr in range(-d):
                v = jnp.where(local_r == lr,
                              _row_shift(z, -2 * lr - d, cache, mode), v)
        elif d > 0:                     # tail reflect: local rows (L-1-d, L-1]
            for lr in range(L - d, L):
                v = jnp.where(local_r == lr,
                              _row_shift(z, 2 * (L - 1) - 2 * lr - d, cache, mode), v)
        views.append(v)
    return views


# ---- the kernel --------------------------------------------------------------
def se_res2net_kernel(x_ref, w_ref, v_ref, out_ref, *, roll_mode):
    f32 = jnp.float32
    bf16 = jnp.bfloat16

    x = x_ref[...]                                           # (BL, C_IN) bf16

    # fused shortcut + tdnn1 1x1 convs: one (BL, C_IN) @ (C_IN, 2*C_OUT) matmul
    w_front = w_ref[R_FRONT:R_FRONT + C_IN, 0:2 * C_OUT]
    h_front = jnp.dot(x, w_front, preferred_element_type=f32)
    h_front = h_front + v_ref[0:1, :]                        # [bsc | b1]
    residual = h_front[:, 0:C_OUT]                           # shortcut branch
    h = jnp.maximum(h_front[:, C_OUT:2 * C_OUT], 0.0)        # tdnn1 ReLU
    h = h * v_ref[1:2, 0:C_OUT] + v_ref[1:2, C_OUT:2 * C_OUT]  # tdnn1 BN

    # local time index within each length-L segment of the flattened batch
    row = jax.lax.broadcasted_iota(jnp.int32, (BL, 1), 0)
    local_r = row % L

    # --- Res2Net: chunk channels, serial hierarchical dilated convs ----------
    ys = []
    y_prev = None
    for i in range(SCALE):
        xi = h[:, i * H:(i + 1) * H]                         # (BL, H)
        if i == 0:
            y_i = xi
        else:
            z = xi if i == 1 else xi + y_prev
            views = _tap_views(z, local_r, roll_mode)
            im2col = jnp.concatenate(views, axis=1).astype(bf16)   # (BL, K*H)
            w_br = w_ref[R_RES:R_RES + K * H, (i - 1) * H:i * H]   # (K*H, H)
            acc = jnp.dot(im2col, w_br, preferred_element_type=f32)
            vb = v_ref[5 + (i - 1):6 + (i - 1), :]           # (1, 64)
            acc = jnp.maximum(acc + vb[:, 0:H], 0.0)
            acc = acc * vb[:, H:2 * H] + vb[:, 2 * H:3 * H]  # branch BN
            y_i = acc
        y_prev = y_i
        ys.append(y_i)
    h2 = jnp.concatenate(ys, axis=1)                         # (BL, C_OUT)

    # --- tdnn2: conv1x1 -> ReLU -> BN ---
    w2 = w_ref[R_W2:R_W2 + C_OUT, 0:C_OUT]
    h3 = jnp.dot(h2.astype(bf16), w2, preferred_element_type=f32)
    h3 = jnp.maximum(h3 + v_ref[2:3, 0:C_OUT], 0.0)
    h3 = h3 * v_ref[2:3, C_OUT:2 * C_OUT] + v_ref[3:4, 0:C_OUT]

    # --- SE block (lengths=None -> per-utterance mean over time) ---
    s = jnp.concatenate(
        [jnp.mean(h3[b * L:(b + 1) * L, :], axis=0, keepdims=True)
         for b in range(B)], axis=0)                         # (B, C_OUT)
    wse1 = w_ref[R_W2:R_W2 + C_OUT, C_OUT:C_OUT + SE_CH]
    u = jnp.dot(s.astype(bf16), wse1, preferred_element_type=f32)
    u = jnp.maximum(u + v_ref[3:4, C_OUT:C_OUT + SE_CH], 0.0)    # (B, SE_CH)
    wse2 = w_ref[R_WSE2:R_WSE2 + SE_CH, 0:C_OUT]
    g = jax.nn.sigmoid(jnp.dot(u.astype(bf16), wse2, preferred_element_type=f32)
                       + v_ref[4:5, 0:C_OUT])                # (B, C_OUT)

    # broadcast each utterance's gate over its L time rows
    g_full = jnp.broadcast_to(g[0:1, :], (BL, C_OUT))
    for b in range(1, B):
        g_full = jnp.where(row >= b * L,
                           jnp.broadcast_to(g[b:b + 1, :], (BL, C_OUT)), g_full)

    out_ref[...] = h3 * g_full + residual
    # TODO(synk): lengths is not None path (masked mean via length_to_mask) not implemented.


# ---- wrapper -----------------------------------------------------------------
def se_res2net_block(x_ncl, slab_w, slab_v):
    """x_ncl: (B, C_IN, L) float32 (PyTorch NCW).  Returns (B, C_OUT, L) float32."""
    roll_mode = _probe_roll_mode()
    x = jnp.transpose(x_ncl, (0, 2, 1)).reshape(BL, C_IN).astype(jnp.bfloat16)
    kernel = functools.partial(se_res2net_kernel, roll_mode=roll_mode)
    out = pl.pallas_call(
        kernel,
        out_shape=jax.ShapeDtypeStruct((BL, C_OUT), jnp.float32),
        grid=(1,),
        in_specs=[pl.BlockSpec((BL, C_IN), lambda i: (0, 0)),
                  pl.BlockSpec((W_ROWS, W_COLS), lambda i: (0, 0)),
                  pl.BlockSpec((V_ROWS, V_COLS), lambda i: (0, 0))],
        out_specs=pl.BlockSpec((BL, C_OUT), lambda i: (0, 0)),
        compiler_params=pltpu.CompilerParams(dimension_semantics=("arbitrary",)),
    )(x, slab_w, slab_v)
    return jnp.transpose(out.reshape(B, L, C_OUT), (0, 2, 1))


# ---- deterministic parameters (BN folded to scale/shift) ----------------------
def make_params(key):
    keys = iter(jax.random.split(key, 64))

    def nrm(shape, scale=0.2):
        return scale * jax.random.normal(next(keys), shape, jnp.float32)

    def bn_fold(c):
        gamma = jax.random.uniform(next(keys), (c,), jnp.float32, 0.5, 1.5)
        beta = nrm((c,), 0.1)
        mean = nrm((c,), 0.1)
        var = jax.random.uniform(next(keys), (c,), jnp.float32, 0.5, 1.5)
        scale = gamma / jnp.sqrt(var + EPS)
        shift = beta - mean * scale
        return scale, shift

    p = {}
    p['wsc'] = nrm((C_IN, C_OUT)); p['bsc'] = nrm((C_OUT,), 0.1)
    p['w1'] = nrm((C_IN, C_OUT)); p['b1'] = nrm((C_OUT,), 0.1)
    p['bn1s'], p['bn1b'] = bn_fold(C_OUT)
    p['wr'] = nrm((SCALE - 1, K * H, H))          # per-branch (K*H, H), tap-major rows
    p['br'] = nrm((SCALE - 1, H), 0.1)
    bnrs, bnrb = [], []
    for _ in range(SCALE - 1):
        s_, b_ = bn_fold(H)
        bnrs.append(s_); bnrb.append(b_)
    p['bnrs'] = jnp.stack(bnrs); p['bnrb'] = jnp.stack(bnrb)
    p['w2'] = nrm((C_OUT, C_OUT)); p['b2'] = nrm((C_OUT,), 0.1)
    p['bn2s'], p['bn2b'] = bn_fold(C_OUT)
    p['wse1'] = nrm((C_OUT, SE_CH)); p['bse1'] = nrm((SE_CH,), 0.1)
    p['wse2'] = nrm((SE_CH, C_OUT)); p['bse2'] = nrm((C_OUT,), 0.1)
    return p


def pack_params(p):
    """Pack the 18 logical parameters into 2 slabs (bf16 weights, f32 vectors)."""
    w = jnp.zeros((W_ROWS, W_COLS), jnp.float32)
    w = w.at[R_FRONT:R_FRONT + C_IN, 0:C_OUT].set(p['wsc'])
    w = w.at[R_FRONT:R_FRONT + C_IN, C_OUT:2 * C_OUT].set(p['w1'])
    w = w.at[R_W2:R_W2 + C_OUT, 0:C_OUT].set(p['w2'])
    w = w.at[R_W2:R_W2 + C_OUT, C_OUT:C_OUT + SE_CH].set(p['wse1'])
    w = w.at[R_WSE2:R_WSE2 + SE_CH, 0:C_OUT].set(p['wse2'])
    for j in range(SCALE - 1):
        w = w.at[R_RES:R_RES + K * H, j * H:(j + 1) * H].set(p['wr'][j])
    slab_w = w.astype(jnp.bfloat16)

    v = jnp.zeros((V_ROWS, V_COLS), jnp.float32)
    v = v.at[0, 0:C_OUT].set(p['bsc']).at[0, C_OUT:2 * C_OUT].set(p['b1'])
    v = v.at[1, 0:C_OUT].set(p['bn1s']).at[1, C_OUT:2 * C_OUT].set(p['bn1b'])
    v = v.at[2, 0:C_OUT].set(p['b2']).at[2, C_OUT:2 * C_OUT].set(p['bn2s'])
    v = v.at[3, 0:C_OUT].set(p['bn2b']).at[3, C_OUT:C_OUT + SE_CH].set(p['bse1'])
    v = v.at[4, 0:C_OUT].set(p['bse2'])
    for j in range(SCALE - 1):
        v = v.at[5 + j, 0:H].set(p['br'][j])
        v = v.at[5 + j, H:2 * H].set(p['bnrs'][j])
        v = v.at[5 + j, 2 * H:3 * H].set(p['bnrb'][j])
    return slab_w, v


# ---- pure-JAX reference (same math & precision policy, whole batch) -----------
def reference(x_ncl, p):
    bf16 = jnp.bfloat16

    def mm(a, w):  # bf16 operands, f32 accumulation — mirrors the kernel
        return jnp.dot(a.astype(bf16), w.astype(bf16),
                       preferred_element_type=jnp.float32)

    x = jnp.transpose(x_ncl, (0, 2, 1))                      # (B, L, C_IN)
    residual = mm(x, p['wsc']) + p['bsc']
    h = jnp.maximum(mm(x, p['w1']) + p['b1'], 0.0) * p['bn1s'] + p['bn1b']
    ys, y_prev = [], None
    for i in range(SCALE):
        xi = h[:, :, i * H:(i + 1) * H]
        if i == 0:
            y_i = xi
        else:
            z = xi if i == 1 else xi + y_prev
            zp = jnp.pad(z, ((0, 0), (PAD, PAD), (0, 0)), mode="reflect")
            im2col = jnp.concatenate(
                [zp[:, t * DIL:t * DIL + L, :] for t in range(K)], axis=2)
            acc = mm(im2col, p['wr'][i - 1]) + p['br'][i - 1]
            y_i = jnp.maximum(acc, 0.0) * p['bnrs'][i - 1] + p['bnrb'][i - 1]
        y_prev = y_i
        ys.append(y_i)
    h2 = jnp.concatenate(ys, axis=2)
    h3 = jnp.maximum(mm(h2, p['w2']) + p['b2'], 0.0) * p['bn2s'] + p['bn2b']
    s = jnp.mean(h3, axis=1, keepdims=True)
    u = jnp.maximum(mm(s, p['wse1']) + p['bse1'], 0.0)
    g = jax.nn.sigmoid(mm(u, p['wse2']) + p['bse2'])
    out = h3 * g + residual
    return jnp.transpose(out, (0, 2, 1))


if __name__ == "__main__":
    key = jax.random.PRNGKey(0)
    kx, kp = jax.random.split(key)
    x = jax.random.normal(kx, (B, C_IN, L), jnp.float32)     # PyTorch NCW layout
    params = make_params(kp)
    slab_w, slab_v = pack_params(params)

    out = jax.block_until_ready(se_res2net_block(x, slab_w, slab_v))
    ref = jax.block_until_ready(reference(x, params))

    assert out.shape == (B, C_OUT, L)
    assert jnp.allclose(out, ref, rtol=1e-2, atol=1e-2), "mismatch vs JAX reference"
    print("KERNEL_OK")
</pallas_src>

<mosaic_0001>
module attributes {stable_mosaic.version = 11 : i64} {
  func.func @k(%arg0: memref<32x8xf32, #tpu.memory_space<vmem>>, %arg1: memref<32x8xf32, #tpu.memory_space<vmem>>) attributes {dimension_semantics = [], scalar_prefetch = 0 : i64, scratch_operands = 0 : i64, tpu.core_type = #tpu.core_type<tc>} {
    %c0 = arith.constant 0 : index
    %c0_0 = arith.constant 0 : index
    %0 = vector.load %arg0[%c0, %c0_0] : memref<32x8xf32, #tpu.memory_space<vmem>>, vector<32x8xf32>
    %c2_i32 = arith.constant 2 : i32
    %1 = tpu.dynamic_rotate %0 by %c2_i32 dim 0 : vector<32x8xf32>, i32 -> vector<32x8xf32>
    %c0_1 = arith.constant 0 : index
    %c0_2 = arith.constant 0 : index
    %2 = vector.load %arg1[%c0_1, %c0_2] : memref<32x8xf32, #tpu.memory_space<vmem>>, vector<32x8xf32>
    tpu.vector_store %arg1[%c0_1, %c0_2], %1 {strides = array<i32>} : memref<32x8xf32, #tpu.memory_space<vmem>>, vector<32x8xf32>,
    return
  }
}

module attributes {stable_mosaic.version = 11 : i64} {
  func.func @se_res2net_kernel(%arg0: i32, %arg1: memref<32x24xbf16, #tpu.memory_space<vmem>>, %arg2: memref<112x64xbf16, #tpu.memory_space<vmem>>, %arg3: memref<8x64xf32, #tpu.memory_space<vmem>>, %arg4: memref<32x32xf32, #tpu.memory_space<vmem>>) attributes {dimension_semantics = [#tpu.dimension_semantics<arbitrary>], iteration_bounds = array<i64: 1>, scalar_prefetch = 0 : i64, scratch_operands = 0 : i64, tpu.core_type = #tpu.core_type<tc>, window_params = [{pipeline_mode = #tpu.pipeline_mode<synchronous>, transform_indices = @transform_0, window_bounds = array<i64: 32, 24>}, {pipeline_mode = #tpu.pipeline_mode<synchronous>, transform_indices = @transform_1, window_bounds = array<i64: 112, 64>}, {pipeline_mode = #tpu.pipeline_mode<synchronous>, transform_indices = @transform_2, window_bounds = array<i64: 8, 64>}, {pipeline_mode = #tpu.pipeline_mode<synchronous>, transform_indices = @transform_3, window_bounds = array<i64: 32, 32>}]} {
    %c0 = arith.constant 0 : index
    %c0_0 = arith.constant 0 : index
    %0 = vector.load %arg1[%c0, %c0_0] : memref<32x24xbf16, #tpu.memory_space<vmem>>, vector<32x24xbf16>
    %c0_1 = arith.constant 0 : index
    %c0_2 = arith.constant 0 : index
    %1 = vector.load %arg2[%c0_1, %c0_2] : memref<112x64xbf16, #tpu.memory_space<vmem>>, vector<24x64xbf16>
    %cst = arith.constant dense<0.000000e+00> : vector<32x64xf32>
    %2 = tpu.matmul %0, %1, %cst {dimension_numbers = #tpu.dot_dimension_numbers<[1], [0], [0], [1], [0, 0, 1, 1], [], []>} : vector<32x24xbf16>, vector<24x64xbf16>, vector<32x64xf32> -> vector<32x64xf32>
    %c0_3 = arith.constant 0 : index
    %c0_4 = arith.constant 0 : index
    %3 = vector.load %arg3[%c0_3, %c0_4] : memref<8x64xf32, #tpu.memory_space<vmem>>, vector<1x64xf32>
    %4 = vector.broadcast %3 : vector<1x64xf32> to vector<32x64xf32>
    %5 = arith.addf %2, %4 : vector<32x64xf32>
    %6 = vector.extract_strided_slice %5 {offsets = [0, 0], sizes = [32, 32], strides = [1, 1]} : vector<32x64xf32> to vector<32x32xf32>
    %7 = vector.extract_strided_slice %5 {offsets = [0, 32], sizes = [32, 32], strides = [1, 1]} : vector<32x64xf32> to vector<32x32xf32>
    %cst_5 = arith.constant 0.000000e+00 : f32
    %8 = vector.broadcast %cst_5 : f32 to vector<32x32xf32>
    %9 = arith.maximumf %7, %8 : vector<32x32xf32>
    %c1 = arith.constant 1 : index
    %c0_6 = arith.constant 0 : index
    %10 = vector.load %arg3[%c1, %c0_6] : memref<8x64xf32, #tpu.memory_space<vmem>>, vector<1x32xf32>
    %11 = vector.broadcast %10 : vector<1x32xf32> to vector<32x32xf32>
    %12 = arith.mulf %9, %11 : vector<32x32xf32>
    %c1_7 = arith.constant 1 : index
    %c32 = arith.constant 32 : index
    %13 = vector.load %arg3[%c1_7, %c32] : memref<8x64xf32, #tpu.memory_space<vmem>>, vector<1x32xf32>
    %14 = vector.broadcast %13 : vector<1x32xf32> to vector<32x32xf32>
    %15 = arith.addf %12, %14 : vector<32x32xf32>
    %16 = tpu.iota {dimensions = array<i32: 0>} : vector<32x1xi32>
    %c16_i32 = arith.constant 16 : i32
    %c0_i32 = arith.constant 0 : i32
    %17 = arith.cmpi eq, %c16_i32, %c0_i32 : i32
    %c1_i32 = arith.constant 1 : i32
    %18 = arith.select %17, %c1_i32, %c16_i32 : i32
    %19 = vector.broadcast %18 : i32 to vector<32x1xi32>
    %20 = arith.remsi %16, %19 : vector<32x1xi32>
    %c0_i32_8 = arith.constant 0 : i32
    %21 = vector.broadcast %c0_i32_8 : i32 to vector<32x1xi32>
    %22 = arith.cmpi ne, %20, %21 : vector<32x1xi32>
    %c0_i32_9 = arith.constant 0 : i32
    %23 = vector.broadcast %c0_i32_9 : i32 to vector<32x1xi32>
    %24 = arith.cmpi slt, %20, %23 : vector<32x1xi32>
    %c0_i32_10 = arith.constant 0 : i32
    %25 = arith.cmpi slt, %18, %c0_i32_10 : i32
    %26 = vector.broadcast %25 : i1 to vector<32x1xi1>
    %27 = vector.broadcast %26 : vector<32x1xi1> to vector<32x1xi1>
    %28 = arith.xori %24, %27 : vector<32x1xi1>
    %29 = arith.andi %28, %22 : vector<32x1xi1>
    %30 = vector.broadcast %18 : i32 to vector<32x1xi32>
    %31 = arith.addi %20, %30 : vector<32x1xi32>
    %32 = arith.select %29, %31, %20 : vector<32x1xi1>, vector<32x1xi32>
    %33 = vector.extract_strided_slice %15 {offsets = [0, 0], sizes = [32, 8], strides = [1, 1]} : vector<32x32xf32> to vector<32x8xf32>
    %34 = vector.extract_strided_slice %15 {offsets = [0, 8], sizes = [32, 8], strides = [1, 1]} : vector<32x32xf32> to vector<32x8xf32>
    %35 = vector.extract_strided_slice %34 {offsets = [30, 0], sizes = [2, 8], strides = [1, 1]} : vector<32x8xf32> to vector<2x8xf32>
    %36 = vector.extract_strided_slice %34 {offsets = [0, 0], sizes = [30, 8], strides = [1, 1]} : vector<32x8xf32> to vector<30x8xf32>
    %37 = tpu.concatenate %35, %36 in 0 : vector<2x8xf32>, vector<30x8xf32> -> vector<32x8xf32>
    %c0_i32_11 = arith.constant 0 : i32
    %38 = vector.broadcast %c0_i32_11 : i32 to vector<32x1xi32>
    %39 = arith.cmpi eq, %32, %38 : vector<32x1xi32>
    %40 = vector.extract_strided_slice %34 {offsets = [2, 0], sizes = [30, 8], strides = [1, 1]} : vector<32x8xf32> to vector<30x8xf32>
    %41 = vector.extract_strided_slice %34 {offsets = [0, 0], sizes = [2, 8], strides = [1, 1]} : vector<32x8xf32> to vector<2x8xf32>
    %42 = tpu.concatenate %40, %41 in 0 : vector<30x8xf32>, vector<2x8xf32> -> vector<32x8xf32>
    %43 = vector.shape_cast %39 : vector<32x1xi1> to vector<32x1xi1>
    %44 = vector.broadcast %43 : vector<32x1xi1> to vector<32x8xi1>
    %45 = arith.select %44, %42, %37 : vector<32x8xi1>, vector<32x8xf32>
    %c1_i32_12 = arith.constant 1 : i32
    %46 = vector.broadcast %c1_i32_12 : i32 to vector<32x1xi32>
    %47 = arith.cmpi eq, %32, %46 : vector<32x1xi32>
    %48 = vector.shape_cast %47 : vector<32x1xi1> to vector<32x1xi1>
    %49 = vector.broadcast %48 : vector<32x1xi1> to vector<32x8xi1>
    %50 = arith.select %49, %34, %45 : vector<32x8xi1>, vector<32x8xf32>
    %c14_i32 = arith.constant 14 : i32
    %51 = vector.broadcast %c14_i32 : i32 to vector<32x1xi32>
    %52 = arith.cmpi eq, %32, %51 : vector<32x1xi32>
    %53 = vector.shape_cast %52 : vector<32x1xi1> to vector<32x1xi1>
    %54 = vector.broadcast %53 : vector<32x1xi1> to vector<32x8xi1>
    %55 = arith.select %54, %34, %42 : vector<32x8xi1>, vector<32x8xf32>
    %c15_i32 = arith.constant 15 : i32
    %56 = vector.broadcast %c15_i32 : i32 to vector<32x1xi32>
    %57 = arith.cmpi eq, %32, %56 : vector<32x1xi32>
    %58 = vector.shape_cast %57 : vector<32x1xi1> to vector<32x1xi1>
    %59 = vector.broadcast %58 : vector<32x1xi1> to vector<32x8xi1>
    %60 = arith.select %59, %37, %55 : vector<32x8xi1>, vector<32x8xf32>
    %61 = tpu.concatenate %50, %34, %60 in 1 : vector<32x8xf32>, vector<32x8xf32>, vector<32x8xf32> -> vector<32x24xf32>
    %62 = arith.truncf %61 : vector<32x24xf32> to vector<32x24xbf16>
    %c80 = arith.constant 80 : index
    %c0_13 = arith.constant 0 : index
    %63 = vector.load %arg2[%c80, %c0_13] : memref<112x64xbf16, #tpu.memory_space<vmem>>, vector<24x8xbf16>
    %cst_14 = arith.constant dense<0.000000e+00> : vector<32x8xf32>
    %64 = tpu.matmul %62, %63, %cst_14 {dimension_numbers = #tpu.dot_dimension_numbers<[1], [0], [0], [1], [0, 0, 1, 1], [], []>} : vector<32x24xbf16>, vector<24x8xbf16>, vector<32x8xf32> -> vector<32x8xf32>
    %c5 = arith.constant 5 : index
    %c0_15 = arith.constant 0 : index
    %65 = vector.load %arg3[%c5, %c0_15] : memref<8x64xf32, #tpu.memory_space<vmem>>, vector<1x64xf32>
    %66 = vector.extract_strided_slice %65 {offsets = [0, 0], sizes = [1, 8], strides = [1, 1]} : vector<1x64xf32> to vector<1x8xf32>
    %67 = vector.broadcast %66 : vector<1x8xf32> to vector<32x8xf32>
    %68 = arith.addf %64, %67 : vector<32x8xf32>
    %cst_16 = arith.constant 0.000000e+00 : f32
    %69 = vector.broadcast %cst_16 : f32 to vector<32x8xf32>
    %70 = arith.maximumf %68, %69 : vector<32x8xf32>
    %71 = vector.extract_strided_slice %65 {offsets = [0, 8], sizes = [1, 8], strides = [1, 1]} : vector<1x64xf32> to vector<1x8xf32>
    %72 = vector.broadcast %71 : vector<1x8xf32> to vector<32x8xf32>
    %73 = arith.mulf %70, %72 : vector<32x8xf32>
    %74 = vector.extract_strided_slice %65 {offsets = [0, 16], sizes = [1, 8], strides = [1, 1]} : vector<1x64xf32> to vector<1x8xf32>
    %75 = vector.broadcast %74 : vector<1x8xf32> to vector<32x8xf32>
    %76 = arith.addf %73, %75 : vector<32x8xf32>
    %77 = vector.extract_strided_slice %15 {offsets = [0, 16], sizes = [32, 8], strides = [1, 1]} : vector<32x32xf32> to vector<32x8xf32>
    %78 = arith.addf %77, %76 : vector<32x8xf32>
    %79 = vector.extract_strided_slice %78 {offsets = [30, 0], sizes = [2, 8], strides = [1, 1]} : vector<32x8xf32> to vector<2x8xf32>
    %80 = vector.extract_strided_slice %78 {offsets = [0, 0], sizes = [30, 8], strides = [1, 1]} : vector<32x8xf32> to vector<30x8xf32>
    %81 = tpu.concatenate %79, %80 in 0 : vector<2x8xf32>, vector<30x8xf32> -> vector<32x8xf32>
    %c0_i32_17 = arith.constant 0 : i32
    %82 = vector.broadcast %c0_i32_17 : i32 to vector<32x1xi32>
    %83 = arith.cmpi eq, %32, %82 : vector<32x1xi32>
    %84 = vector.extract_strided_slice %78 {offsets = [2, 0], sizes = [30, 8], strides = [1, 1]} : vector<32x8xf32> to vector<30x8xf32>
    %85 = vector.extract_strided_slice %78 {offsets = [0, 0], sizes = [2, 8], strides = [1, 1]} : vector<32x8xf32> to vector<2x8xf32>
    %86 = tpu.concatenate %84, %85 in 0 : vector<30x8xf32>, vector<2x8xf32> -> vector<32x8xf32>
    %87 = vector.shape_cast %83 : vector<32x1xi1> to vector<32x1xi1>
    %88 = vector.broadcast %87 : vector<32x1xi1> to vector<32x8xi1>
    %89 = arith.select %88, %86, %81 : vector<32x8xi1>, vector<32x8xf32>
    %c1_i32_18 = arith.constant 1 : i32
    %90 = vector.broadcast %c1_i32_18 : i32 to vector<32x1xi32>
    %91 = arith.cmpi eq, %32, %90 : vector<32x1xi32>
    %92 = vector.shape_cast %91 : vector<32x1xi1> to vector<32x1xi1>
    %93 = vector.broadcast %92 : vector<32x1xi1> to vector<32x8xi1>
    %94 = arith.select %93, %78, %89 : vector<32x8xi1>, vector<32x8xf32>
    %c14_i32_19 = arith.constant 14 : i32
    %95 = vector.broadcast %c14_i32_19 : i32 to vector<32x1xi32>
    %96 = arith.cmpi eq, %32, %95 : vector<32x1xi32>
    %97 = vector.shape_cast %96 : vector<32x1xi1> to vector<32x1xi1>
    %98 = vector.broadcast %97 : vector<32x1xi1> to vector<32x8xi1>
    %99 = arith.select %98, %78, %86 : vector<32x8xi1>, vector<32x8xf32>
    %c15_i32_20 = arith.constant 15 : i32
    %100 = vector.broadcast %c15_i32_20 : i32 to vector<32x1xi32>
    %101 = arith.cmpi eq, %32, %100 : vector<32x1xi32>
    %102 = vector.shape_cast %101 : vector<32x1xi1> to vector<32x1xi1>
    %103 = vector.broadcast %102 : vector<32x1xi1> to vector<32x8xi1>
    %104 = arith.select %103, %81, %99 : vector<32x8xi1>, vector<32x8xf32>
    %105 = tpu.concatenate %94, %78, %104 in 1 : vector<32x8xf32>, vector<32x8xf32>, vector<32x8xf32> -> vector<32x24xf32>
    %106 = arith.truncf %105 : vector<32x24xf32> to vector<32x24xbf16>
    %c80_21 = arith.constant 80 : index
    %c8 = arith.constant 8 : index
    %107 = vector.load %arg2[%c80_21, %c8] : memref<112x64xbf16, #tpu.memory_space<vmem>>, vector<24x8xbf16>
    %cst_22 = arith.constant dense<0.000000e+00> : vector<32x8xf32>
    %108 = tpu.matmul %106, %107, %cst_22 {dimension_numbers = #tpu.dot_dimension_numbers<[1], [0], [0], [1], [0, 0, 1, 1], [], []>} : vector<32x24xbf16>, vector<24x8xbf16>, vector<32x8xf32> -> vector<32x8xf32>
    %c6 = arith.constant 6 : index
    %c0_23 = arith.constant 0 : index
    %109 = vector.load %arg3[%c6, %c0_23] : memref<8x64xf32, #tpu.memory_space<vmem>>, vector<1x64xf32>
    %110 = vector.extract_strided_slice %109 {offsets = [0, 0], sizes = [1, 8], strides = [1, 1]} : vector<1x64xf32> to vector<1x8xf32>
    %111 = vector.broadcast %110 : vector<1x8xf32> to vector<32x8xf32>
    %112 = arith.addf %108, %111 : vector<32x8xf32>
    %cst_24 = arith.constant 0.000000e+00 : f32
    %113 = vector.broadcast %cst_24 : f32 to vector<32x8xf32>
    %114 = arith.maximumf %112, %113 : vector<32x8xf32>
    %115 = vector.extract_strided_slice %109 {offsets = [0, 8], sizes = [1, 8], strides = [1, 1]} : vector<1x64xf32> to vector<1x8xf32>
    %116 = vector.broadcast %115 : vector<1x8xf32> to vector<32x8xf32>
    %117 = arith.mulf %114, %116 : vector<32x8xf32>
    %118 = vector.extract_strided_slice %109 {offsets = [0, 16], sizes = [1, 8], strides = [1, 1]} : vector<1x64xf32> to vector<1x8xf32>
    %119 = vector.broadcast %118 : vector<1x8xf32> to vector<32x8xf32>
    %120 = arith.addf %117, %119 : vector<32x8xf32>
    %121 = vector.extract_strided_slice %15 {offsets = [0, 24], sizes = [32, 8], strides = [1, 1]} : vector<32x32xf32> to vector<32x8xf32>
    %122 = arith.addf %121, %120 : vector<32x8xf32>
    %123 = vector.extract_strided_slice %122 {offsets = [30, 0], sizes = [2, 8], strides = [1, 1]} : vector<32x8xf32> to vector<2x8xf32>
    %124 = vector.extract_strided_slice %122 {offsets = [0, 0], sizes = [30, 8], strides = [1, 1]} : vector<32x8xf32> to vector<30x8xf32>
    %125 = tpu.concatenate %123, %124 in 0 : vector<2x8xf32>, vector<30x8xf32> -> vector<32x8xf32>
    %c0_i32_25 = arith.constant 0 : i32
    %126 = vector.broadcast %c0_i32_25 : i32 to vector<32x1xi32>
    %127 = arith.cmpi eq, %32, %126 : vector<32x1xi32>
    %128 = vector.extract_strided_slice %122 {offsets = [2, 0], sizes = [30, 8], strides = [1, 1]} : vector<32x8xf32> to vector<30x8xf32>
    %129 = vector.extract_strided_slice %122 {offsets = [0, 0], sizes = [2, 8], strides = [1, 1]} : vector<32x8xf32> to vector<2x8xf32>
    %130 = tpu.concatenate %128, %129 in 0 : vector<30x8xf32>, vector<2x8xf32> -> vector<32x8xf32>
    %131 = vector.shape_cast %127 : vector<32x1xi1> to vector<32x1xi1>
    %132 = vector.broadcast %131 : vector<32x1xi1> to vector<32x8xi1>
    %133 = arith.select %132, %130, %125 : vector<32x8xi1>, vector<32x8xf32>
    %c1_i32_26 = arith.constant 1 : i32
    %134 = vector.broadcast %c1_i32_26 : i32 to vector<32x1xi32>
    %135 = arith.cmpi eq, %32, %134 : vector<32x1xi32>
    %136 = vector.shape_cast %135 : vector<32x1xi1> to vector<32x1xi1>
    %137 = vector.broadcast %136 : vector<32x1xi1> to vector<32x8xi1>
    %138 = arith.select %137, %122, %133 : vector<32x8xi1>, vector<32x8xf32>
    %c14_i32_27 = arith.constant 14 : i32
    %139 = vector.broadcast %c14_i32_27 : i32 to vector<32x1xi32>
    %140 = arith.cmpi eq, %32, %139 : vector<32x1xi32>
    %141 = vector.shape_cast %140 : vector<32x1xi1> to vector<32x1xi1>
    %142 = vector.broadcast %141 : vector<32x1xi1> to vector<32x8xi1>
    %143 = arith.select %142, %122, %130 : vector<32x8xi1>, vector<32x8xf32>
    %c15_i32_28 = arith.constant 15 : i32
    %144 = vector.broadcast %c15_i32_28 : i32 to vector<32x1xi32>
    %145 = arith.cmpi eq, %32, %144 : vector<32x1xi32>
    %146 = vector.shape_cast %145 : vector<32x1xi1> to vector<32x1xi1>
    %147 = vector.broadcast %146 : vector<32x1xi1> to vector<32x8xi1>
    %148 = arith.select %147, %125, %143 : vector<32x8xi1>, vector<32x8xf32>
    %149 = tpu.concatenate %138, %122, %148 in 1 : vector<32x8xf32>, vector<32x8xf32>, vector<32x8xf32> -> vector<32x24xf32>
    %150 = arith.truncf %149 : vector<32x24xf32> to vector<32x24xbf16>
    %c80_29 = arith.constant 80 : index
    %c16 = arith.constant 16 : index
    %151 = vector.load %arg2[%c80_29, %c16] : memref<112x64xbf16, #tpu.memory_space<vmem>>, vector<24x8xbf16>
    %cst_30 = arith.constant dense<0.000000e+00> : vector<32x8xf32>
    %152 = tpu.matmul %150, %151, %cst_30 {dimension_numbers = #tpu.dot_dimension_numbers<[1], [0], [0], [1], [0, 0, 1, 1], [], []>} : vector<32x24xbf16>, vector<24x8xbf16>, vector<32x8xf32> -> vector<32x8xf32>
    %c7 = arith.constant 7 : index
    %c0_31 = arith.constant 0 : index
    %153 = vector.load %arg3[%c7, %c0_31] : memref<8x64xf32, #tpu.memory_space<vmem>>, vector<1x64xf32>
    %154 = vector.extract_strided_slice %153 {offsets = [0, 0], sizes = [1, 8], strides = [1, 1]} : vector<1x64xf32> to vector<1x8xf32>
    %155 = vector.broadcast %154 : vector<1x8xf32> to vector<32x8xf32>
    %156 = arith.addf %152, %155 : vector<32x8xf32>
    %cst_32 = arith.constant 0.000000e+00 : f32
    %157 = vector.broadcast %cst_32 : f32 to vector<32x8xf32>
    %158 = arith.maximumf %156, %157 : vector<32x8xf32>
    %159 = vector.extract_strided_slice %153 {offsets = [0, 8], sizes = [1, 8], strides = [1, 1]} : vector<1x64xf32> to vector<1x8xf32>
    %160 = vector.broadcast %159 : vector<1x8xf32> to vector<32x8xf32>
    %161 = arith.mulf %158, %160 : vector<32x8xf32>
    %162 = vector.extract_strided_slice %153 {offsets = [0, 16], sizes = [1, 8], strides = [1, 1]} : vector<1x64xf32> to vector<1x8xf32>
    %163 = vector.broadcast %162 : vector<1x8xf32> to vector<32x8xf32>
    %164 = arith.addf %161, %163 : vector<32x8xf32>
    %165 = tpu.concatenate %33, %76, %120, %164 in 1 : vector<32x8xf32>, vector<32x8xf32>, vector<32x8xf32>, vector<32x8xf32> -> vector<32x32xf32>
    %c32_33 = arith.constant 32 : index
    %c0_34 = arith.constant 0 : index
    %166 = vector.load %arg2[%c32_33, %c0_34] : memref<112x64xbf16, #tpu.memory_space<vmem>>, vector<32x32xbf16>
    %167 = arith.truncf %165 : vector<32x32xf32> to vector<32x32xbf16>
    %cst_35 = arith.constant dense<0.000000e+00> : vector<32x32xf32>
    %168 = tpu.matmul %167, %166, %cst_35 {dimension_numbers = #tpu.dot_dimension_numbers<[1], [0], [0], [1], [0, 0, 1, 1], [], []>} : vector<32x32xbf16>, vector<32x32xbf16>, vector<32x32xf32> -> vector<32x32xf32>
    %c2 = arith.constant 2 : index
    %c0_36 = arith.constant 0 : index
    %169 = vector.load %arg3[%c2, %c0_36] : memref<8x64xf32, #tpu.memory_space<vmem>>, vector<1x32xf32>
    %170 = vector.broadcast %169 : vector<1x32xf32> to vector<32x32xf32>
    %171 = arith.addf %168, %170 : vector<32x32xf32>
    %cst_37 = arith.constant 0.000000e+00 : f32
    %172 = vector.broadcast %cst_37 : f32 to vector<32x32xf32>
    %173 = arith.maximumf %171, %172 : vector<32x32xf32>
    %c2_38 = arith.constant 2 : index
    %c32_39 = arith.constant 32 : index
    %174 = vector.load %arg3[%c2_38, %c32_39] : memref<8x64xf32, #tpu.memory_space<vmem>>, vector<1x32xf32>
    %175 = vector.broadcast %174 : vector<1x32xf32> to vector<32x32xf32>
    %176 = arith.mulf %173, %175 : vector<32x32xf32>
    %c3 = arith.constant 3 : index
    %c0_40 = arith.constant 0 : index
    %177 = vector.load %arg3[%c3, %c0_40] : memref<8x64xf32, #tpu.memory_space<vmem>>, vector<1x32xf32>
    %178 = vector.broadcast %177 : vector<1x32xf32> to vector<32x32xf32>
    %179 = arith.addf %176, %178 : vector<32x32xf32>
    %180 = vector.extract_strided_slice %179 {offsets = [0, 0], sizes = [16, 32], strides = [1, 1]} : vector<32x32xf32> to vector<16x32xf32>
    %cst_41 = arith.constant dense<0.000000e+00> : vector<32xf32>
    %181 = vector.multi_reduction <add>, %180, %cst_41 [0] : vector<16x32xf32> to vector<32xf32>
    %182 = vector.shape_cast %181 : vector<32xf32> to vector<1x32xf32>
    %cst_42 = arith.constant 1.600000e+01 : f32
    %183 = vector.broadcast %cst_42 : f32 to vector<1x32xf32>
    %184 = arith.divf %182, %183 : vector<1x32xf32>
    %185 = vector.extract_strided_slice %179 {offsets = [16, 0], sizes = [16, 32], strides = [1, 1]} : vector<32x32xf32> to vector<16x32xf32>
    %cst_43 = arith.constant dense<0.000000e+00> : vector<32xf32>
    %186 = vector.multi_reduction <add>, %185, %cst_43 [0] : vector<16x32xf32> to vector<32xf32>
    %187 = vector.shape_cast %186 : vector<32xf32> to vector<1x32xf32>
    %cst_44 = arith.constant 1.600000e+01 : f32
    %188 = vector.broadcast %cst_44 : f32 to vector<1x32xf32>
    %189 = arith.divf %187, %188 : vector<1x32xf32>
    %190 = tpu.concatenate %184, %189 in 0 : vector<1x32xf32>, vector<1x32xf32> -> vector<2x32xf32>
    %c32_45 = arith.constant 32 : index
    %c32_46 = arith.constant 32 : index
    %191 = vector.load %arg2[%c32_45, %c32_46] : memref<112x64xbf16, #tpu.memory_space<vmem>>, vector<32x16xbf16>
    %192 = arith.truncf %190 : vector<2x32xf32> to vector<2x32xbf16>
    %cst_47 = arith.constant dense<0.000000e+00> : vector<2x16xf32>
    %193 = tpu.matmul %192, %191, %cst_47 {dimension_numbers = #tpu.dot_dimension_numbers<[1], [0], [0], [1], [0, 0, 1, 1], [], []>} : vector<2x32xbf16>, vector<32x16xbf16>, vector<2x16xf32> -> vector<2x16xf32>
    %c3_48 = arith.constant 3 : index
    %c32_49 = arith.constant 32 : index
    %194 = vector.load %arg3[%c3_48, %c32_49] : memref<8x64xf32, #tpu.memory_space<vmem>>, vector<1x16xf32>
    %195 = vector.broadcast %194 : vector<1x16xf32> to vector<2x16xf32>
    %196 = arith.addf %193, %195 : vector<2x16xf32>
    %cst_50 = arith.constant 0.000000e+00 : f32
    %197 = vector.broadcast %cst_50 : f32 to vector<2x16xf32>
    %198 = arith.maximumf %196, %197 : vector<2x16xf32>
    %c64 = arith.constant 64 : index
    %c0_51 = arith.constant 0 : index
    %199 = vector.load %arg2[%c64, %c0_51] : memref<112x64xbf16, #tpu.memory_space<vmem>>, vector<16x32xbf16>
    %200 = arith.truncf %198 : vector<2x16xf32> to vector<2x16xbf16>
    %cst_52 = arith.constant dense<0.000000e+00> : vector<2x32xf32>
    %201 = tpu.matmul %200, %199, %cst_52 {dimension_numbers = #tpu.dot_dimension_numbers<[1], [0], [0], [1], [0, 0, 1, 1], [], []>} : vector<2x16xbf16>, vector<16x32xbf16>, vector<2x32xf32> -> vector<2x32xf32>
    %c4 = arith.constant 4 : index
    %c0_53 = arith.constant 0 : index
    %202 = vector.load %arg3[%c4, %c0_53] : memref<8x64xf32, #tpu.memory_space<vmem>>, vector<1x32xf32>
    %203 = vector.broadcast %202 : vector<1x32xf32> to vector<2x32xf32>
    %204 = arith.addf %201, %203 : vector<2x32xf32>
    %205 = arith.negf %204 : vector<2x32xf32>
    %206 = math.exp %205 : vector<2x32xf32>
    %cst_54 = arith.constant 1.000000e+00 : f32
    %207 = vector.broadcast %cst_54 : f32 to vector<2x32xf32>
    %208 = arith.addf %207, %206 : vector<2x32xf32>
    %209 = arith.divf %207, %208 : vector<2x32xf32>
    %210 = vector.extract_strided_slice %209 {offsets = [0, 0], sizes = [1, 32], strides = [1, 1]} : vector<2x32xf32> to vector<1x32xf32>
    %211 = vector.shape_cast %210 : vector<1x32xf32> to vector<1x32xf32>
    %212 = vector.broadcast %211 : vector<1x32xf32> to vector<32x32xf32>
    %c16_i32_55 = arith.constant 16 : i32
    %213 = vector.broadcast %c16_i32_55 : i32 to vector<32x1xi32>
    %214 = arith.cmpi sge, %16, %213 : vector<32x1xi32>
    %215 = vector.extract_strided_slice %209 {offsets = [1, 0], sizes = [1, 32], strides = [1, 1]} : vector<2x32xf32> to vector<1x32xf32>
    %216 = vector.shape_cast %215 : vector<1x32xf32> to vector<1x32xf32>
    %217 = vector.broadcast %216 : vector<1x32xf32> to vector<32x32xf32>
    %218 = vector.shape_cast %214 : vector<32x1xi1> to vector<32x1xi1>
    %219 = vector.broadcast %218 : vector<32x1xi1> to vector<32x32xi1>
    %220 = arith.select %219, %217, %212 : vector<32x32xi1>, vector<32x32xf32>
    %221 = arith.mulf %179, %220 : vector<32x32xf32>
    %222 = arith.addf %221, %6 : vector<32x32xf32>
    %c0_56 = arith.constant 0 : index
    %c0_57 = arith.constant 0 : index
    %223 = vector.load %arg4[%c0_56, %c0_57] : memref<32x32xf32, #tpu.memory_space<vmem>>, vector<32x32xf32>
    tpu.vector_store %arg4[%c0_56, %c0_57], %222 {strides = array<i32>} : memref<32x32xf32, #tpu.memory_space<vmem>>, vector<32x32xf32>,
    return
  }
  func.func @transform_0(%arg0: i32) -> (i32, i32) {
    %c0_i32 = arith.constant 0 : i32
    %c0_i32_0 = arith.constant 0 : i32
    %c0_i32_1 = arith.constant 0 : i32
    return %c0_i32, %c0_i32_0 : i32, i32
  }
  func.func @transform_1(%arg0: i32) -> (i32, i32) {
    %c0_i32 = arith.constant 0 : i32
    %c0_i32_0 = arith.constant 0 : i32
    %c0_i32_1 = arith.constant 0 : i32
    return %c0_i32, %c0_i32_0 : i32, i32
  }
  func.func @transform_2(%arg0: i32) -> (i32, i32) {
    %c0_i32 = arith.constant 0 : i32
    %c0_i32_0 = arith.constant 0 : i32
    %c0_i32_1 = arith.constant 0 : i32
    return %c0_i32, %c0_i32_0 : i32, i32
  }
  func.func @transform_3(%arg0: i32) -> (i32, i32) {
    %c0_i32 = arith.constant 0 : i32
    %c0_i32_0 = arith.constant 0 : i32
    %c0_i32_1 = arith.constant 0 : i32
    return %c0_i32, %c0_i32_0 : i32, i32
  }
}

</mosaic_0001>

<bundles_post_ra>
// kernel: tpu_custom_call.1
= control target key start
LH: loop header
LB: loop body
LE: loop exit
PB: predicated region body
PF: predicated region fallthrough
CT: control target
= control target key end

     0   :  { %v16_v0 = vlaneseq  ;;  %vm23_vm0 = vcmask 64512   ;;  %s66_s0 = inlined_call_operand.vmem [shape: f32[32,8], index: 0, kind: input, shape index: {}]   ;;  %s67_s1 = inlined_call_operand.vmem [shape: f32[32,8], index: 1, kind: output, shape index: {}]  }
   0x1   :  { %v8_v1 = vld [vmem:[%s66_s0] sm:$0xff]  ;;  %v11_v2 = vld [vmem:[%s66_s0 + $0x18] sm:$0xff]  ;;  %v9_v3 = vld [vmem:[%s66_s0 + $0x8] sm:$0xff] }
   0x2   :  { %v12_v4 = vrot.slane %v8_v1, 6  ;;  %v15_v5 = vrot.slane %v11_v2, 6  ;;  %v17_v6 = vshrl.u32 %v16_v0, 7  ;;  %v13_v7 = vrot.slane %v9_v3, 6  ;;  %v10_v8 = vld [vmem:[%s66_s0 + $0x10] sm:$0xff] }
   0x3   :  { %v14_v9 = vrot.slane %v10_v8, 6 }
   0x4   :  { %vm18_vm1 = vcmp.lt.s32.totalorder %v17_v6, 2 }
   0x5   :  { %v22_v10 = vsel %vm18_vm1, %v15_v5, %v12_v4  ;;  %v21_v11 = vsel %vm18_vm1, %v12_v4, %v13_v7  ;;  %v20_v12 = vsel %vm18_vm1, %v13_v7, %v14_v9  ;;  %v19_v13 = vsel %vm18_vm1, %v14_v9, %v15_v5 }
   0x6   :  { %24 = vst.msk [vmem:[%s67_s1] sm:$0xff] %vm23_vm0, %v22_v10 }
   0x7   :  { %25 = vst.msk [vmem:[%s67_s1 + $0x8] sm:$0xff] %vm23_vm0, %v21_v11 }
   0x8   :  { %26 = vst.msk [vmem:[%s67_s1 + $0x10] sm:$0xff] %vm23_vm0, %v20_v12 }
   0x9   :  { %27 = vst.msk [vmem:[%s67_s1 + $0x18] sm:$0xff] %vm23_vm0, %v19_v13 }

// kernel: tpu_custom_call.1
= control target key start
LH: loop header
LB: loop body
LE: loop exit
PB: predicated region body
PF: predicated region fallthrough
CT: control target
= control target key end

     0   :  { %vm51_vm0 = vcmask 1043456   ;;  %s1199_s16 = smov 32   ;;  %s1623_s0 = inlined_call_operand.vmem [shape: bf16[32,24], index: 0, kind: input, shape index: {}]   ;;  %s1624_s1 = inlined_call_operand.vmem [shape: bf16[112,64], index: 1, kind: input, shape index: {}]   ;;  %s1625_s2 = inlined_call_operand.vmem [shape: f32[8,64], index: 2, kind: input, shape index: {}]   ;;  %s1626_s3 = inlined_call_operand.hbm [shape: f32[32,32], index: 3, kind: output, shape index: {}]  }
   0x1   :  { %v22_v0 = vld [vmem:[%s1624_s1 + $0x8] sm:$0xf]  ;;  %v1159_v2 = vld [vmem:[%s1625_s2 + $0x1] ss:$0 sm:$0xff] }
   0x2   :  { %v40_v1 = vunpack.c.l.b16 %v22_v0  ;;  %81 = vrot.lane.b32.xlu0 %v1159_v2, %s1199_s16 }
   0x4   :  { %v42_v3 = vpack.c.b16 %v40_v1, %v40_v1 }
   0x5   :  { %8 = vsyncpa [#allocation3], 0  ;;  %v1016_v5 = vld [vmem:[%s1624_s1] sm:$0xff]  ;;  %v1015_v7 = vld [vmem:[%s1623_s0 + $0x8] sm:$0xff]  ;;  %vm44_vm1 = vcmask 195584   ;;  %v92_v10 = vlaneseq  ;;  %vm151_vm2 = vcmask 1041408  }
   0x6   :  { %v53_v4 = vsel %vm51_vm0, %v42_v3, 0  ;;  %v1014_v6 = vld [vmem:[%s1623_s0] sm:$0xff]  ;;  %vm167_vm3 = vcmask 1045504   ;;  %s1200_s0 = smov 96   ;;  %s1201_s25 = smov 104   ;;  %vm290_vm12 = vcmask 130048  }
   0x7   :  { %61 = vmatpush.bf16.msra.mxu0 %v53_v4  ;;  %1021 = vmatpush.bf16.msra.mxu3 %v53_v4  ;;  %v1160_v8 = vld [vmem:[%s1625_s2] ss:$0 sm:$0xff]  ;;  %v93_v13 = vshrl.u32 %v92_v10, 7  ;;  %s1202_s26 = smov 88   ;;  %s1203_s6 = smov 120   ;;  %vm285_vm13 = vcmask 64512  }
   0x8   :  { %s1204_s7 = smov 112   ;;  %s1205_s8 = smov 48   ;;  %v1509_v55 = vld [vmem:[%s1625_s2 + $0x7] ss:$0 sm:$0xff]  ;;  %vm778_vm14 = vcmask 261120  }
   0x9   :  { %v94_v19 = vadd.s32 8, %v93_v13  ;;  %v95_v29 = vadd.s32 16, %v93_v13  ;;  %v96_v40 = vadd.s32 24, %v93_v13  ;;  %v101_v45 = vand.u32 15, %v93_v13  ;;  %s1206_s9 = smov 80   ;;  %s1207_s12 = smov 56  }
   0xa   :  { %s1208_s13 = smov 72   ;;  %s1209_s16 = smov 16  }
   0xb   :  { %62 = vmatpush.bf16.msra.mxu0 %v1016_v5  ;;  %1022 = vmatpush.bf16.msra.mxu3 %v1016_v5  ;;  %v108_v25 = vand.u32 15, %v94_v19  ;;  %v115_v41 = vand.u32 15, %v95_v29  ;;  %v122_v50 = vand.u32 15, %v96_v40  ;;  %vm1306_vm7 = vcmp.eq.s32.totalorder %v101_v45, 0  ;;  %v1362_v19 = vld [vmem:[%s1624_s1 + $0x28] sm:$0xff]  ;;  %s1210_s17 = smov 8  }
   0xc   :  { %vm1315_vm9 = vcmp.eq.s32.totalorder %v101_v45, 1  ;;  %s1211_s20 = smov 24   ;;  %s961_s5 = sshll.u32 %s1626_s3, 4  ;;  %s962_s5 = int_to_ptr.hbm [resolvable:$true] %s961_s5 }
   0xd   :  { %vm1275_vm4 = vcmp.eq.s32.totalorder %v108_v25, 14  ;;  %vm1284_vm5 = vcmp.eq.s32.totalorder %v108_v25, 15  ;;  %vm1299_vm6 = vcmp.eq.s32.totalorder %v115_v41, 0  ;;  %vm1311_vm8 = vcmp.eq.s32.totalorder %v115_v41, 1 }
   0xe   :  { %985 = vmatmul.msk.bf16.vlgmr.msra.gmra.mxu0 %vm44_vm1, %v1014_v6  ;;  %986 = vmatmul.msk.bf16.vlgmr.msra.gmra.mxu3 %vm44_vm1, %v1015_v7  ;;  %vm1324_vm10 = vcmp.eq.s32.totalorder %v122_v50, 14  ;;  %vm1338_vm11 = vcmp.eq.s32.totalorder %v122_v50, 15 }
  0x74   :  { %v82_v14 = vpop.permute.xlu0 %81 }
  0x8b   :  { %v64_v9 = vpop.f32.mrf.mxu0 }
  0x8c   :  { %v1256_v11 = vadd.f32 %v1160_v8, %v64_v9 }
  0x8e   :  { %v74_v12 = vmax.f32 %v1256_v11, 0.0 }
  0x90   :  { %v84_v17 = vmul.f32 %v82_v14, %v74_v12 }
  0x91   :  { %v69_v15 = vpop.f32.mrf.mxu3 }
  0x92   :  { %v1259_v16 = vadd.f32 %v1160_v8, %v69_v15  ;;  %v1265_v24 = vadd.f32 %v1159_v2, %v84_v17 }
  0x93   :  { %v66_v18 = vpop.f32.mrf.mxu0 }
  0x94   :  { %v76_v20 = vmax.f32 %v1259_v16, 0.0  ;;  %v1262_v21 = vadd.f32 %v1160_v8, %v66_v18  ;;  %v152_v32 = vrot.slane %v1265_v24, 6  ;;  %v168_v48 = vrot.slane %v1265_v24, 2 }
  0x96   :  { %v86_v22 = vmul.f32 %v82_v14, %v76_v20  ;;  %v75_v23 = vmax.f32 %v1262_v21, 0.0  ;;  %v1161_v20 = vld [vmem:[%s1625_s2 + $0x5] ss:$0 sm:$0xff] }
  0x98   :  { %v1267_v26 = vadd.f32 %v1159_v2, %v86_v22  ;;  %v85_v27 = vmul.f32 %v82_v14, %v75_v23 }
  0x99   :  { %v71_v28 = vpop.f32.mrf.mxu3 }
  0x9a   :  { %v1269_v30 = vadd.f32 %v1159_v2, %v85_v27  ;;  %v1271_v31 = vadd.f32 %v1160_v8, %v71_v28  ;;  %v171_v33 = vrot.slane %v1267_v26, 2  ;;  %v155_v53 = vrot.slane %v1267_v26, 6 }
  0x9c   :  { %v77_v35 = vmax.f32 %v1271_v31, 0.0  ;;  %v1044_v36 = vpack.i.bf16 %v1269_v30, %v1265_v24  ;;  %v153_v37 = vrot.slane %v1269_v30, 6  ;;  %v169_v38 = vrot.slane %v1269_v30, 2 }
  0x9e   :  { %v87_v42 = vmul.f32 %v82_v14, %v77_v35  ;;  %1045 = vrot.lane.b32.xlu1 %v1044_v36, %s1200_s0  ;;  %v154_v43 = vsel %vm151_vm2, %v152_v32, %v153_v37  ;;  %v172_v44 = vsel %vm167_vm3, %v169_v38, %v171_v33  ;;  %v170_v56 = vsel %vm167_vm3, %v168_v48, %v169_v38  ;;  %v299_v14 = vld [vmem:[%s1624_s1 + $0x30] sm:$0xf] }
  0x9f   :  { %v222_v46 = vsel %vm1275_vm4, %v1269_v30, %v172_v44  ;;  %v156_v60 = vsel %vm151_vm2, %v153_v37, %v155_v53  ;;  %v307_v15 = vunpack.c.l.b16 %v299_v14 }
  0xa0   :  { %v1294_v47 = vadd.f32 %v1159_v2, %v87_v42  ;;  %v238_v49 = vsel %vm1284_vm5, %v154_v43, %v222_v46 }
  0xa1   :  { %v1049_v59 = vpack.i.bf16 %v238_v49, %v170_v56  ;;  %v1355_v17 = vpack.c.b16 %v307_v15, %v307_v15 }
  0xa2   :  { %v146_v52 = vrot.slane %v1294_v47, 6  ;;  %v173_v54 = vrot.slane %v1294_v47, 2  ;;  %v1059_v12 = vpack.i.bf16 %v1294_v47, %v1267_v26 }
  0xa3   :  { %v318_v18 = vsel %vm51_vm0, %v1355_v17, 0 }
  0xa4   :  { %v174_v61 = vsel %vm167_vm3, %v171_v33, %v173_v54  ;;  %v162_v62 = vsel %vm151_vm2, %v146_v52, %v152_v32  ;;  %v157_v2 = vsel %vm151_vm2, %v155_v53, %v146_v52  ;;  %v180_v4 = vsel %vm167_vm3, %v173_v54, %v168_v48  ;;  %326 = vmatpush.bf16.msra.mxu1 %v318_v18 }
  0xa5   :  { %v191_v63 = vsel %vm1299_vm6, %v174_v61, %v156_v60  ;;  %v189_v1 = vsel %vm1306_vm7, %v170_v56, %v162_v62  ;;  %v224_v9 = vsel %vm1324_vm10, %v1294_v47, %v180_v4 }
  0xa6   :  { %1050 = vrot.lane.b32.xlu1 %v1049_v59, %s1201_s25  ;;  %v207_v3 = vsel %vm1311_vm8, %v1267_v26, %v191_v63  ;;  %v205_v5 = vsel %vm1315_vm9, %v1265_v24, %v189_v1  ;;  %v240_v10 = vsel %vm1338_vm11, %v157_v2, %v224_v9 }
  0xa7   :  { %v1054_v6 = vpack.i.bf16 %v157_v2, %v207_v3  ;;  %v1039_v7 = vpack.i.bf16 %v154_v43, %v205_v5  ;;  %v1064_v13 = vpack.i.bf16 %v240_v10, %v174_v61 }
  0xa8   :  { %327 = vmatpush.bf16.msra.mxu1 %v1362_v19 }
  0xa9   :  { %1055 = vrot.lane.b32.xlu2 %v1054_v6, %s1202_s26  ;;  %1040 = vrot.lane.b32.xlu0 %v1039_v7, %s1202_s26 }
  0xae   :  { %344 = vrot.lane.b32.xlu1 %v1161_v20, %s1203_s6 }
  0xb1   :  { %1060 = vrot.lane.b32.xlu2 %v1059_v12, %s1200_s0  ;;  %1065 = vrot.lane.b32.xlu0 %v1064_v13, %s1201_s25 }
  0xb9   :  { %351 = vrot.lane.b32.xlu2 %v1161_v20, %s1204_s7 }
 0x103   :  { %v1056_v25 = vpop.permute.xlu2 %1055 }
 0x104   :  { %v1058_v50 = vunpack.i.h.bf16 %v1056_v25  ;;  %v1057_v52 = vunpack.i.l.bf16 %v1056_v25 }
 0x10b   :  { %v1383_v43 = vpop.permute.xlu2 %1060 }
 0x10c   :  { %v1063_v45 = vunpack.i.h.bf16 %v1383_v43  ;;  %v1062_v46 = vunpack.i.l.bf16 %v1383_v43  ;;  %v1165_v43 = vld [vmem:[%s1625_s2 + $0x3] ss:$0 sm:$0xff] }
 0x10e   :  { %v288_v53 = vsel %vm285_vm13, %v1057_v52, %v1062_v46  ;;  %v289_v54 = vsel %vm285_vm13, %v1058_v50, %v1063_v45 }
 0x110   :  { %v1370_v22 = vpop.permute.xlu1 %1045 }
 0x111   :  { %v1048_v28 = vunpack.i.h.bf16 %v1370_v22  ;;  %v1047_v29 = vunpack.i.l.bf16 %v1370_v22 }
 0x113   :  { %v352_v2 = vpop.permute.xlu2 %351 }
 0x118   :  { %v1051_v23 = vpop.permute.xlu1 %1050 }
 0x119   :  { %v1053_v35 = vunpack.i.h.bf16 %v1051_v23  ;;  %v1052_v36 = vunpack.i.l.bf16 %v1051_v23 }
 0x11b   :  { %v1041_v27 = vpop.permute.xlu0 %1040 }
 0x11c   :  { %v1043_v32 = vunpack.i.h.bf16 %v1041_v27  ;;  %v1042_v33 = vunpack.i.l.bf16 %v1041_v27 }
 0x11e   :  { %v287_v37 = vsel %vm285_vm13, %v1043_v32, %v1048_v28  ;;  %v286_v38 = vsel %vm285_vm13, %v1042_v33, %v1047_v29 }
 0x11f   :  { %v291_v40 = vsel %vm290_vm12, %v286_v38, %v1052_v36  ;;  %v292_v41 = vsel %vm290_vm12, %v287_v37, %v1053_v35 }
 0x120   :  { %v295_v42 = vpack.c.bf16 %v292_v41, %v291_v40  ;;  %v345_v63 = vpop.permute.xlu1 %344 }
 0x122   :  { %991 = vmatmul.msk.bf16.vlgmr.msra.gmra.mxu1 %vm44_vm1, %v295_v42 }
 0x123   :  { %v1066_v44 = vpop.permute.xlu0 %1065 }
 0x124   :  { %v1068_v48 = vunpack.i.h.bf16 %v1066_v44  ;;  %v1067_v49 = vunpack.i.l.bf16 %v1066_v44 }
 0x126   :  { %v293_v56 = vsel %vm290_vm12, %v288_v53, %v1067_v49  ;;  %v294_v59 = vsel %vm290_vm12, %v289_v54, %v1068_v48 }
 0x127   :  { %v296_v60 = vpack.c.bf16 %v294_v59, %v293_v56 }
 0x132   :  { %992 = vmatmul.msk.bf16.gmra.mxu1 %vm44_vm1, %v296_v60 }
 0x19f   :  { %v329_v61 = vpop.f32.mrf.mxu1 }
 0x1a0   :  { %v330_v62 = vadd.f32 %v1161_v20, %v329_v61 }
 0x1a2   :  { %v339_v1 = vmax.f32 %v330_v62, 0.0 }
 0x1a4   :  { %v347_v3 = vmul.f32 %v345_v63, %v339_v1 }
 0x1a6   :  { %v1396_v4 = vadd.f32 %v352_v2, %v347_v3 }
 0x1a7   :  { %v331_v5 = vpop.f32.mrf.mxu1 }
 0x1a8   :  { %v332_v6 = vadd.f32 %v1161_v20, %v331_v5  ;;  %362 = vrot.lane.b32.xlu0 %v1396_v4, %s1205_s8 }
 0x1aa   :  { %v340_v7 = vmax.f32 %v332_v6, 0.0 }
 0x1ac   :  { %v348_v9 = vmul.f32 %v345_v63, %v340_v7 }
 0x1ae   :  { %v1399_v10 = vadd.f32 %v352_v2, %v348_v9 }
 0x1af   :  { %v334_v12 = vpop.f32.mrf.mxu1 }
 0x1b0   :  { %v335_v13 = vadd.f32 %v1161_v20, %v334_v12  ;;  %364 = vrot.lane.b32.xlu1 %v1399_v10, %s1205_s8  ;;  %v1129_v14 = vpack.i.bf16 %v1399_v10, %v1396_v4 }
 0x1b2   :  { %v341_v15 = vmax.f32 %v335_v13, 0.0 }
 0x1b4   :  { %v349_v18 = vmul.f32 %v345_v63, %v341_v15 }
 0x1b6   :  { %v1404_v23 = vadd.f32 %v352_v2, %v349_v18 }
 0x1b7   :  { %v336_v25 = vpop.f32.mrf.mxu1 }
 0x1b8   :  { %v337_v27 = vadd.f32 %v1161_v20, %v336_v25  ;;  %366 = vrot.lane.b32.xlu0 %v1404_v23, %s1205_s8  ;;  %482 = vrot.lane.b32.xlu1 %v1355_v17, %s1203_s6 }
 0x1ba   :  { %v342_v32 = vmax.f32 %v337_v27, 0.0 }
 0x1bc   :  { %v350_v33 = vmul.f32 %v345_v63, %v342_v32 }
 0x1be   :  { %v1409_v35 = vadd.f32 %v352_v2, %v350_v33 }
 0x1c0   :  { %368 = vrot.lane.b32.xlu2 %v1409_v35, %s1205_s8  ;;  %v1144_v36 = vpack.i.bf16 %v1409_v35, %v1404_v23 }
 0x21a   :  { %v369_v37 = vpop.permute.xlu2 %368  ;;  %v363_v38 = vpop.permute.xlu0 %362 }
 0x21b   :  { %v377_v40 = vadd.f32 %v369_v37, %v1294_v47  ;;  %v374_v20 = vadd.f32 %v363_v38, %v1265_v24 }
 0x21d   :  { %v379_v42 = vrot.slane %v377_v40, 6  ;;  %v384_v44 = vrot.slane %v374_v20, 6  ;;  %v395_v49 = vrot.slane %v374_v20, 2  ;;  %v400_v2 = vrot.slane %v377_v40, 2 }
 0x21f   :  { %v394_v54 = vsel %vm151_vm2, %v379_v42, %v384_v44  ;;  %v407_v33 = vsel %vm167_vm3, %v400_v2, %v395_v49 }
 0x220   :  { %v419_v37 = vsel %vm1324_vm10, %v377_v40, %v407_v33 }
 0x222   :  { %v365_v41 = vpop.permute.xlu1 %364 }
 0x223   :  { %v375_v48 = vadd.f32 %v365_v41, %v1269_v30 }
 0x225   :  { %v385_v50 = vrot.slane %v375_v48, 6  ;;  %v396_v52 = vrot.slane %v375_v48, 2  ;;  %v1069_v53 = vpack.i.bf16 %v375_v48, %v374_v20 }
 0x227   :  { %1070 = vrot.lane.b32.xlu0 %v1069_v53, %s1202_s26  ;;  %v397_v56 = vsel %vm167_vm3, %v395_v49, %v396_v52  ;;  %v386_v60 = vsel %vm151_vm2, %v384_v44, %v385_v50 }
 0x228   :  { %v408_v59 = vsel %vm1306_vm7, %v397_v56, %v394_v54 }
 0x229   :  { %v412_v61 = vsel %vm1315_vm9, %v374_v20, %v408_v59 }
 0x22a   :  { %v367_v62 = vpop.permute.xlu0 %366  ;;  %v1079_v63 = vpack.i.bf16 %v386_v60, %v412_v61 }
 0x22b   :  { %v376_v1 = vadd.f32 %v367_v62, %v1267_v26 }
 0x22c   :  { %1080 = vrot.lane.b32.xlu2 %v1079_v63, %s1206_s9 }
 0x22d   :  { %v387_v3 = vrot.slane %v376_v1, 6  ;;  %v398_v5 = vrot.slane %v376_v1, 2  ;;  %v1089_v20 = vpack.i.bf16 %v377_v40, %v376_v1 }
 0x22f   :  { %v399_v6 = vsel %vm167_vm3, %v396_v52, %v398_v5  ;;  %v388_v7 = vsel %vm151_vm2, %v385_v50, %v387_v3  ;;  %v401_v9 = vsel %vm167_vm3, %v398_v5, %v400_v2  ;;  %v389_v18 = vsel %vm151_vm2, %v387_v3, %v379_v42  ;;  %v483_v42 = vpop.permute.xlu1 %482  ;;  %v1162_v50 = vld [vmem:[%s1625_s2 + $0x6] ss:$0 sm:$0xff] }
 0x230   :  { %v417_v12 = vsel %vm1275_vm4, %v375_v48, %v399_v6  ;;  %v410_v13 = vsel %vm1299_vm6, %v401_v9, %v388_v7  ;;  %v423_v38 = vsel %vm1338_vm11, %v389_v18, %v419_v37  ;;  %v492_v44 = vsel %vm51_vm0, %v483_v42, 0 }
 0x231   :  { %v421_v15 = vsel %vm1284_vm5, %v386_v60, %v417_v12  ;;  %v414_v25 = vsel %vm1311_vm8, %v376_v1, %v410_v13  ;;  %v1094_v41 = vpack.i.bf16 %v423_v38, %v401_v9  ;;  %500 = vmatpush.bf16.msra.mxu2 %v492_v44 }
 0x232   :  { %v1074_v27 = vpack.i.bf16 %v421_v15, %v397_v56  ;;  %v1084_v32 = vpack.i.bf16 %v389_v18, %v414_v25 }
 0x234   :  { %480 = vrot.lane.b32.xlu2 %v1362_v19, %s1203_s6  ;;  %1075 = vrot.lane.b32.xlu1 %v1074_v27, %s1200_s0 }
 0x235   :  { %1085 = vrot.lane.b32.xlu0 %v1084_v32, %s1206_s9 }
 0x23c   :  { %1090 = vrot.lane.b32.xlu1 %v1089_v20, %s1202_s26  ;;  %1095 = vrot.lane.b32.xlu2 %v1094_v41, %s1200_s0 }
 0x23d   :  { %518 = vrot.lane.b32.xlu0 %v1162_v50, %s1203_s6 }
 0x244   :  { %525 = vrot.lane.b32.xlu1 %v1162_v50, %s1204_s7 }
 0x286   :  { %v1081_v48 = vpop.permute.xlu2 %1080 }
 0x287   :  { %v1083_v54 = vunpack.i.h.bf16 %v1081_v48  ;;  %v1082_v56 = vunpack.i.l.bf16 %v1081_v48 }
 0x28e   :  { %v481_v49 = vpop.permute.xlu2 %480 }
 0x28f   :  { %501 = vmatpush.bf16.msra.mxu2 %v481_v49 }
 0x296   :  { %v1096_v12 = vpop.permute.xlu2 %1095 }
 0x297   :  { %v1098_v27 = vunpack.i.h.bf16 %v1096_v12  ;;  %v1097_v32 = vunpack.i.l.bf16 %v1096_v12 }
 0x299   :  { %v1071_v40 = vpop.permute.xlu0 %1070 }
 0x29a   :  { %v1073_v52 = vunpack.i.h.bf16 %v1071_v40  ;;  %v1072_v53 = vunpack.i.l.bf16 %v1071_v40 }
 0x29c   :  { %v469_v62 = vsel %vm285_vm13, %v1083_v54, %v1073_v52  ;;  %v468_v63 = vsel %vm285_vm13, %v1082_v56, %v1072_v53 }
 0x2a6   :  { %v1076_v59 = vpop.permute.xlu1 %1075 }
 0x2a7   :  { %v1078_v60 = vunpack.i.h.bf16 %v1076_v59  ;;  %v1077_v61 = vunpack.i.l.bf16 %v1076_v59  ;;  %v1086_v6 = vpop.permute.xlu0 %1085 }
 0x2a8   :  { %v1088_v13 = vunpack.i.h.bf16 %v1086_v6  ;;  %v1087_v15 = vunpack.i.l.bf16 %v1086_v6 }
 0x2a9   :  { %v472_v1 = vsel %vm290_vm12, %v468_v63, %v1077_v61  ;;  %v473_v2 = vsel %vm290_vm12, %v469_v62, %v1078_v60 }
 0x2aa   :  { %v476_v3 = vpack.c.bf16 %v473_v2, %v472_v1 }
 0x2ac   :  { %993 = vmatmul.msk.bf16.vlgmr.msra.gmra.mxu2 %vm44_vm1, %v476_v3 }
 0x2ae   :  { %v1091_v5 = vpop.permute.xlu1 %1090 }
 0x2af   :  { %v1093_v7 = vunpack.i.h.bf16 %v1091_v5  ;;  %v1092_v9 = vunpack.i.l.bf16 %v1091_v5  ;;  %v519_v42 = vpop.permute.xlu0 %518 }
 0x2b1   :  { %v470_v18 = vsel %vm285_vm13, %v1087_v15, %v1092_v9  ;;  %v471_v25 = vsel %vm285_vm13, %v1088_v13, %v1093_v7 }
 0x2b2   :  { %v474_v33 = vsel %vm290_vm12, %v470_v18, %v1097_v32  ;;  %v475_v37 = vsel %vm290_vm12, %v471_v25, %v1098_v27 }
 0x2b3   :  { %v477_v38 = vpack.c.bf16 %v475_v37, %v474_v33 }
 0x2b6   :  { %v526_v48 = vpop.permute.xlu1 %525 }
 0x2bc   :  { %994 = vmatmul.msk.bf16.gmra.mxu2 %vm44_vm1, %v477_v38 }
 0x32f   :  { %v503_v20 = vpop.f32.mrf.mxu2 }
 0x330   :  { %v504_v41 = vadd.f32 %v1162_v50, %v503_v20 }
 0x332   :  { %v513_v44 = vmax.f32 %v504_v41, 0.0 }
 0x334   :  { %v521_v49 = vmul.f32 %v519_v42, %v513_v44 }
 0x336   :  { %v1466_v40 = vadd.f32 %v526_v48, %v521_v49 }
 0x337   :  { %v505_v52 = vpop.f32.mrf.mxu2 }
 0x338   :  { %v506_v53 = vadd.f32 %v1162_v50, %v505_v52  ;;  %536 = vrot.lane.b32.xlu2 %v1466_v40, %s1207_s12 }
 0x33a   :  { %v514_v54 = vmax.f32 %v506_v53, 0.0 }
 0x33c   :  { %v522_v56 = vmul.f32 %v519_v42, %v514_v54 }
 0x33e   :  { %v1469_v59 = vadd.f32 %v526_v48, %v522_v56 }
 0x33f   :  { %v508_v60 = vpop.f32.mrf.mxu2 }
 0x340   :  { %v509_v61 = vadd.f32 %v1162_v50, %v508_v60  ;;  %538 = vrot.lane.b32.xlu0 %v1469_v59, %s1207_s12  ;;  %v1134_v62 = vpack.i.bf16 %v1469_v59, %v1466_v40 }
 0x342   :  { %v515_v63 = vmax.f32 %v509_v61, 0.0 }
 0x344   :  { %v523_v1 = vmul.f32 %v519_v42, %v515_v63 }
 0x346   :  { %v1474_v2 = vadd.f32 %v526_v48, %v523_v1 }
 0x347   :  { %v510_v3 = vpop.f32.mrf.mxu2 }
 0x348   :  { %v511_v5 = vadd.f32 %v1162_v50, %v510_v3  ;;  %540 = vrot.lane.b32.xlu2 %v1474_v2, %s1207_s12  ;;  %656 = vrot.lane.b32.xlu0 %v1355_v17, %s1204_s7 }
 0x34a   :  { %v516_v6 = vmax.f32 %v511_v5, 0.0 }
 0x34c   :  { %v524_v7 = vmul.f32 %v519_v42, %v516_v6 }
 0x34e   :  { %v531_v9 = vadd.f32 %v526_v48, %v524_v7 }
 0x350   :  { %542 = vrot.lane.b32.xlu1 %v531_v9, %s1207_s12  ;;  %v1149_v12 = vpack.i.bf16 %v531_v9, %v1474_v2 }
 0x392   :  { %v537_v13 = vpop.permute.xlu2 %536 }
 0x393   :  { %v548_v18 = vadd.f32 %v537_v13, %v1265_v24 }
 0x395   :  { %v558_v32 = vrot.slane %v548_v18, 6  ;;  %v569_v20 = vrot.slane %v548_v18, 2 }
 0x3a2   :  { %v541_v15 = vpop.permute.xlu2 %540 }
 0x3a3   :  { %v550_v25 = vadd.f32 %v541_v15, %v1267_v26 }
 0x3a5   :  { %v572_v33 = vrot.slane %v550_v25, 2  ;;  %v561_v40 = vrot.slane %v550_v25, 6 }
 0x3b2   :  { %v539_v27 = vpop.permute.xlu0 %538 }
 0x3b3   :  { %v549_v50 = vadd.f32 %v539_v27, %v1269_v30 }
 0x3b5   :  { %v559_v37 = vrot.slane %v549_v50, 6  ;;  %v570_v38 = vrot.slane %v549_v50, 2  ;;  %v1099_v17 = vpack.i.bf16 %v549_v50, %v548_v18 }
 0x3b7   :  { %1100 = vrot.lane.b32.xlu2 %v1099_v17, %s1206_s9  ;;  %v560_v41 = vsel %vm151_vm2, %v558_v32, %v559_v37  ;;  %v573_v42 = vsel %vm167_vm3, %v570_v38, %v572_v33  ;;  %v571_v26 = vsel %vm167_vm3, %v569_v20, %v570_v38  ;;  %v562_v56 = vsel %vm151_vm2, %v559_v37, %v561_v40 }
 0x3b8   :  { %v591_v24 = vsel %vm1275_vm4, %v549_v50, %v573_v42 }
 0x3b9   :  { %v595_v30 = vsel %vm1284_vm5, %v560_v41, %v591_v24 }
 0x3ba   :  { %v1104_v44 = vpack.i.bf16 %v595_v30, %v571_v26  ;;  %v657_v0 = vpop.permute.xlu0 %656 }
 0x3bb   :  { %v666_v8 = vsel %vm51_vm0, %v657_v0, 0  ;;  %vm849_vm0 = vcmask 1040384  }
 0x3bc   :  { %1105 = vrot.lane.b32.xlu0 %v1104_v44, %s1202_s26  ;;  %674 = vmatpush.bf16.msrb.mxu3 %v666_v8 }
 0x3c2   :  { %v543_v48 = vpop.permute.xlu1 %542 }
 0x3c3   :  { %v551_v49 = vadd.f32 %v543_v48, %v1294_v47  ;;  %v1019_v48 = vld [vmem:[%s1624_s1 + $0x18] sm:$0xff] }
 0x3c4   :  { %791 = vmatpush.bf16.msrb.mxu0 %v1019_v48 }
 0x3c5   :  { %v553_v52 = vrot.slane %v551_v49, 6  ;;  %v574_v53 = vrot.slane %v551_v49, 2  ;;  %v1119_v54 = vpack.i.bf16 %v551_v49, %v550_v25 }
 0x3c7   :  { %1120 = vrot.lane.b32.xlu0 %v1119_v54, %s1206_s9  ;;  %v568_v34 = vsel %vm151_vm2, %v553_v52, %v558_v32  ;;  %v575_v59 = vsel %vm167_vm3, %v572_v33, %v574_v53  ;;  %v563_v61 = vsel %vm151_vm2, %v561_v40, %v553_v52  ;;  %v581_v51 = vsel %vm167_vm3, %v574_v53, %v569_v20 }
 0x3c8   :  { %v582_v39 = vsel %vm1306_vm7, %v571_v26, %v568_v34  ;;  %v584_v60 = vsel %vm1299_vm6, %v575_v59, %v562_v56  ;;  %v593_v57 = vsel %vm1324_vm10, %v551_v49, %v581_v51 }
 0x3c9   :  { %v586_v47 = vsel %vm1315_vm9, %v548_v18, %v582_v39  ;;  %v588_v63 = vsel %vm1311_vm8, %v550_v25, %v584_v60  ;;  %v597_v58 = vsel %vm1338_vm11, %v563_v61, %v593_v57 }
 0x3ca   :  { %v1109_v1 = vpack.i.bf16 %v560_v41, %v586_v47  ;;  %v1114_v2 = vpack.i.bf16 %v563_v61, %v588_v63  ;;  %v1124_v3 = vpack.i.bf16 %v597_v58, %v575_v59 }
 0x3cc   :  { %1110 = vrot.lane.b32.xlu1 %v1109_v1, %s1208_s13  ;;  %1115 = vrot.lane.b32.xlu2 %v1114_v2, %s1208_s13 }
 0x3cf   :  { %699 = vrot.lane.b32.xlu0 %v1509_v55, %s1204_s7 }
 0x3d4   :  { %654 = vrot.lane.b32.xlu1 %v1362_v19, %s1204_s7  ;;  %692 = vrot.lane.b32.xlu2 %v1509_v55, %s1203_s6  ;;  %s1214_s6 = smov 128  }
 0x3dc   :  { %1125 = vrot.lane.b32.xlu1 %v1124_v3, %s1202_s26  ;;  %1135 = vrot.lane.b32.xlu2 %v1134_v62, %s1209_s16 }
 0x3e4   :  { %1130 = vrot.lane.b32.xlu1 %v1129_v14, %s1210_s17  ;;  %1150 = vrot.lane.b32.xlu2 %v1149_v12, %s1209_s16 }
 0x3ec   :  { %1145 = vrot.lane.b32.xlu1 %v1144_v36, %s1210_s17  ;;  %854 = vrot.lane.b32.xlu2 %v1019_v48, %s1200_s0 }
 0x411   :  { %v1101_v19 = vpop.permute.xlu2 %1100 }
 0x412   :  { %v1103_v7 = vunpack.i.h.bf16 %v1101_v19  ;;  %v1102_v9 = vunpack.i.l.bf16 %v1101_v19 }
 0x426   :  { %v1116_v27 = vpop.permute.xlu2 %1115 }
 0x427   :  { %v1118_v38 = vunpack.i.h.bf16 %v1116_v27  ;;  %v1117_v17 = vunpack.i.l.bf16 %v1116_v27 }
 0x42e   :  { %v1106_v13 = vpop.permute.xlu0 %1105  ;;  %v693_v53 = vpop.permute.xlu2 %692 }
 0x42f   :  { %v1108_v14 = vunpack.i.h.bf16 %v1106_v13  ;;  %v1107_v12 = vunpack.i.l.bf16 %v1106_v13 }
 0x439   :  { %v1121_v18 = vpop.permute.xlu0 %1120 }
 0x43a   :  { %v1123_v50 = vunpack.i.h.bf16 %v1121_v18  ;;  %v1122_v32 = vunpack.i.l.bf16 %v1121_v18 }
 0x43c   :  { %v644_v20 = vsel %vm285_vm13, %v1117_v17, %v1122_v32  ;;  %v645_v41 = vsel %vm285_vm13, %v1118_v38, %v1123_v50 }
 0x43e   :  { %v1111_v5 = vpop.permute.xlu1 %1110 }
 0x43f   :  { %v1113_v6 = vunpack.i.h.bf16 %v1111_v5  ;;  %v1112_v62 = vunpack.i.l.bf16 %v1111_v5  ;;  %v1018_v5 = vld [vmem:[%s1624_s1 + $0x10] sm:$0xff] }
 0x440   :  { %792 = vmatpush.bf16.msrb.mxu0 %v1018_v5 }
 0x441   :  { %v642_v4 = vsel %vm285_vm13, %v1112_v62, %v1102_v9  ;;  %v643_v10 = vsel %vm285_vm13, %v1113_v6, %v1103_v7  ;;  %v700_v56 = vpop.permute.xlu0 %699  ;;  %v1557_v6 = vld [vmem:[%s1625_s2 + $0x2] ss:$0 sm:$0xff]  ;;  %v1136_v9 = vpop.permute.xlu2 %1135 }
 0x442   :  { %v646_v23 = vsel %vm290_vm12, %v642_v4, %v1107_v12  ;;  %v647_v35 = vsel %vm290_vm12, %v643_v10, %v1108_v14  ;;  %809 = vrot.lane.b32.xlu1 %v1557_v6, %s1200_s0  ;;  %v1138_v10 = vunpack.i.h.bf16 %v1136_v9  ;;  %v1137_v14 = vunpack.i.l.bf16 %v1136_v9 }
 0x443   :  { %v650_v15 = vpack.c.bf16 %v647_v35, %v646_v23 }
 0x446   :  { %v655_v36 = vpop.permute.xlu1 %654 }
 0x447   :  { %675 = vmatpush.bf16.msrb.mxu3 %v655_v36 }
 0x449   :  { %v1151_v50 = vpop.permute.xlu2 %1150 }
 0x44a   :  { %995 = vmatmul.msk.bf16.vlgmr.msrb.gmra.mxu3 %vm44_vm1, %v650_v15  ;;  %v1152_v38 = vunpack.i.l.bf16 %v1151_v50  ;;  %859 = vrot.lane.b32.xlu1 %v1165_v43, %s1200_s0 }
 0x44e   :  { %v1126_v25 = vpop.permute.xlu1 %1125 }
 0x44f   :  { %v1128_v33 = vunpack.i.h.bf16 %v1126_v25  ;;  %v1127_v37 = vunpack.i.l.bf16 %v1126_v25 }
 0x451   :  { %v648_v42 = vsel %vm290_vm12, %v644_v20, %v1127_v37  ;;  %v649_v24 = vsel %vm290_vm12, %v645_v41, %v1128_v33  ;;  %v1153_v37 = vunpack.i.h.bf16 %v1151_v50 }
 0x452   :  { %v651_v26 = vpack.c.bf16 %v649_v24, %v648_v42 }
 0x45a   :  { %996 = vmatmul.msk.bf16.gmra.mxu3 %vm44_vm1, %v651_v26 }
 0x4cd   :  { %v677_v30 = vpop.f32.mrf.mxu3 }
 0x4ce   :  { %v678_v44 = vadd.f32 %v1509_v55, %v677_v30 }
 0x4d0   :  { %v687_v49 = vmax.f32 %v678_v44, 0.0 }
 0x4d2   :  { %v695_v54 = vmul.f32 %v693_v53, %v687_v49 }
 0x4d4   :  { %v702_v39 = vadd.f32 %v700_v56, %v695_v54 }
 0x4d5   :  { %v679_v40 = vpop.f32.mrf.mxu3 }
 0x4d6   :  { %v680_v52 = vadd.f32 %v1509_v55, %v679_v40 }
 0x4d8   :  { %v688_v34 = vmax.f32 %v680_v52, 0.0 }
 0x4da   :  { %v696_v59 = vmul.f32 %v693_v53, %v688_v34 }
 0x4dc   :  { %v703_v60 = vadd.f32 %v700_v56, %v696_v59 }
 0x4dd   :  { %v682_v47 = vpop.f32.mrf.mxu3 }
 0x4de   :  { %v1139_v61 = vpack.i.bf16 %v703_v60, %v702_v39  ;;  %v683_v63 = vadd.f32 %v1509_v55, %v682_v47 }
 0x4e0   :  { %1140 = vrot.lane.b32.xlu0 %v1139_v61, %s1211_s20  ;;  %v689_v1 = vmax.f32 %v683_v63, 0.0 }
 0x4e2   :  { %v697_v57 = vmul.f32 %v693_v53, %v689_v1 }
 0x4e4   :  { %v704_v0 = vadd.f32 %v700_v56, %v697_v57 }
 0x4e5   :  { %v684_v2 = vpop.f32.mrf.mxu3 }
 0x4e6   :  { %v685_v51 = vadd.f32 %v1509_v55, %v684_v2  ;;  %v1131_v55 = vpop.permute.xlu1 %1130 }
 0x4e7   :  { %v1133_v62 = vunpack.i.h.bf16 %v1131_v55  ;;  %v1132_v7 = vunpack.i.l.bf16 %v1131_v55 }
 0x4e8   :  { %v690_v58 = vmax.f32 %v685_v51, 0.0  ;;  %v1212_v51 = vmov 16.0  }
 0x4e9   :  { %v747_v13 = vsel %vm285_vm13, %v1048_v28, %v1133_v62  ;;  %v746_v4 = vsel %vm285_vm13, %v1047_v29, %v1132_v7  ;;  %1167 = vrcp.f32 %v1212_v51 }
 0x4ea   :  { %v698_v3 = vmul.f32 %v693_v53, %v690_v58  ;;  %v750_v36 = vsel %vm290_vm12, %v746_v4, %v1137_v14  ;;  %v751_v15 = vsel %vm290_vm12, %v747_v13, %v1138_v10  ;;  %v1020_v58 = vld [vmem:[%s1624_s1 + $0x20] sm:$0xff] }
 0x4eb   :  { %900 = vmatpush.bf16.msrb.mxu2 %v1020_v58 }
 0x4ec   :  { %v705_v8 = vadd.f32 %v700_v56, %v698_v3  ;;  %v855_v56 = vpop.permute.xlu2 %854 }
 0x4ed   :  { %871 = vmatpush.bf16.msrb.mxu1 %v855_v56 }
 0x4ee   :  { %v1154_v19 = vpack.i.bf16 %v705_v8, %v704_v0  ;;  %v1146_v22 = vpop.permute.xlu1 %1145 }
 0x4ef   :  { %v1148_v28 = vunpack.i.h.bf16 %v1146_v22  ;;  %v1147_v29 = vunpack.i.l.bf16 %v1146_v22 }
 0x4f0   :  { %1155 = vrot.lane.b32.xlu0 %v1154_v19, %s1211_s20 }
 0x4f1   :  { %v749_v32 = vsel %vm285_vm13, %v1063_v45, %v1148_v28  ;;  %v748_v33 = vsel %vm285_vm13, %v1062_v46, %v1147_v29 }
 0x4f2   :  { %v752_v42 = vsel %vm290_vm12, %v748_v33, %v1152_v38  ;;  %v753_v24 = vsel %vm290_vm12, %v749_v32, %v1153_v37 }
 0x4f6   :  { %v810_v49 = vpop.permute.xlu1 %809 }
 0x4f8   :  { %852 = vrot.lane.b32.xlu0 %v1018_v5, %s1200_s0  ;;  %v1168_v5 = vpop.eup %1167 }
 0x4f9   :  { %v832_v13 = vmul.f32 16.0, %v1168_v5  ;;  %vm836_vm15 = vweird.f32 %v1168_v5 }
 0x552   :  { %v1141_v12 = vpop.permute.xlu0 %1140 }
 0x553   :  { %v1143_v23 = vunpack.i.h.bf16 %v1141_v12  ;;  %v1142_v35 = vunpack.i.l.bf16 %v1141_v12 }
 0x555   :  { %v755_v18 = vsel %vm44_vm1, %v751_v15, %v1143_v23  ;;  %v754_v25 = vsel %vm44_vm1, %v750_v36, %v1142_v35  ;;  %v833_v23 = vsub.f32 1.0, %v832_v13 }
 0x556   :  { %v762_v27 = vpack.c.bf16 %v755_v18, %v754_v25 }
 0x557   :  { %v834_v18 = vmul.f32 %v1168_v5, %v833_v23 }
 0x558   :  { %1005 = vmatmul.msk.bf16.vlgmr.msrb.gmra.mxu0 %vm778_vm14, %v762_v27 }
 0x559   :  { %v835_v22 = vadd.f32 %v1168_v5, %v834_v18 }
 0x55b   :  { %v837_v32 = vsel %vm836_vm15, %v1168_v5, %v835_v22 }
 0x562   :  { %v1156_v17 = vpop.permute.xlu0 %1155 }
 0x563   :  { %v1158_v20 = vunpack.i.h.bf16 %v1156_v17  ;;  %v1157_v41 = vunpack.i.l.bf16 %v1156_v17 }
 0x565   :  { %v756_v26 = vsel %vm44_vm1, %v752_v42, %v1157_v41  ;;  %v757_v30 = vsel %vm44_vm1, %v753_v24, %v1158_v20  ;;  %v860_v41 = vpop.permute.xlu1 %859 }
 0x566   :  { %v763_v44 = vpack.c.bf16 %v757_v30, %v756_v26 }
 0x568   :  { %1006 = vmatmul.msk.bf16.gmra.mxu0 %vm778_vm14, %v763_v44 }
 0x56a   :  { %v853_v47 = vpop.permute.xlu0 %852 }
 0x56b   :  { %872 = vmatpush.bf16.msrb.mxu1 %v853_v47 }
 0x5d5   :  { %v794_v45 = vpop.f32.mrf.mxu0 }
 0x5d6   :  { %v795_v46 = vadd.f32 %v1557_v6, %v794_v45 }
 0x5d8   :  { %v804_v48 = vmax.f32 %v795_v46, 0.0 }
 0x5da   :  { %v812_v53 = vmul.f32 %v810_v49, %v804_v48 }
 0x5dc   :  { %v1589_v59 = vadd.f32 %v1165_v43, %v812_v53 }
 0x5dd   :  { %v796_v40 = vpop.f32.mrf.mxu0 }
 0x5de   :  { %v797_v52 = vadd.f32 %v1557_v6, %v796_v40  ;;  %v822_v1 = vsel %vm778_vm14, %v1589_v59, 0.0 }
 0x5e0   :  { %v805_v54 = vmax.f32 %v797_v52, 0.0 }
 0x5e2   :  { %v813_v34 = vmul.f32 %v810_v49, %v805_v54 }
 0x5e4   :  { %v1591_v39 = vadd.f32 %v1165_v43, %v813_v34 }
 0x5e5   :  { %v799_v60 = vpop.f32.mrf.mxu0 }
 0x5e6   :  { %v823_v61 = vsel %vm778_vm14, %v1591_v39, 0.0  ;;  %v800_v63 = vadd.f32 %v1557_v6, %v799_v60 }
 0x5e7   :  { %v824_v2 = vadd.f32 %v823_v61, %v822_v1 }
 0x5e8   :  { %v806_v57 = vmax.f32 %v800_v63, 0.0 }
 0x5e9   :  { %v825_v3 = vrot.slane %v824_v2, 4 }
 0x5ea   :  { %v814_v8 = vmul.f32 %v810_v49, %v806_v57 }
 0x5eb   :  { %v826_v62 = vadd.f32 %v825_v3, %v824_v2 }
 0x5ec   :  { %v820_v7 = vadd.f32 %v1165_v43, %v814_v8 }
 0x5ed   :  { %v801_v0 = vpop.f32.mrf.mxu0  ;;  %v827_v10 = vrot.slane %v826_v62, 2 }
 0x5ee   :  { %v802_v19 = vadd.f32 %v1557_v6, %v801_v0  ;;  %v839_v14 = vsel %vm778_vm14, %v820_v7, 0.0 }
 0x5ef   :  { %v828_v36 = vadd.f32 %v827_v10, %v826_v62 }
 0x5f0   :  { %v807_v55 = vmax.f32 %v802_v19, 0.0 }
 0x5f1   :  { %v829_v27 = vrot.slane %v828_v36, 1 }
 0x5f2   :  { %v815_v9 = vmul.f32 %v810_v49, %v807_v55 }
 0x5f3   :  { %v830_v29 = vadd.f32 %v829_v27, %v828_v36 }
 0x5f4   :  { %v821_v4 = vadd.f32 %v1165_v43, %v815_v9  ;;  %v1166_v43 = vld [vmem:[%s1625_s2 + $0x4] ss:$0 sm:$0xff]  ;;  %s1213_s2 = smov [#allocation2]  }
 0x5f5   :  { %v838_v37 = vmul.f32 %v837_v32, %v830_v29  ;;  %s959_s29 = sshll.u32 %s1213_s2, 4  ;;  %s960_s29 = int_to_ptr.vmem [resolvable:$true] %s959_s29 }
 0x5f6   :  { %v840_v12 = vsel %vm778_vm14, %v821_v4, 0.0 }
 0x5f7   :  { %v841_v35 = vadd.f32 %v840_v12, %v839_v14 }
 0x5f9   :  { %v842_v15 = vrot.slane %v841_v35, 4 }
 0x5fb   :  { %v843_v25 = vadd.f32 %v842_v15, %v841_v35 }
 0x5fd   :  { %v844_v6 = vrot.slane %v843_v25, 2 }
 0x5ff   :  { %v845_v28 = vadd.f32 %v844_v6, %v843_v25 }
 0x601   :  { %v846_v50 = vrot.slane %v845_v28, 1 }
 0x603   :  { %v847_v33 = vadd.f32 %v846_v50, %v845_v28 }
 0x605   :  { %v848_v38 = vmul.f32 %v847_v33, %v837_v32 }
 0x607   :  { %v850_v17 = vsel %vm849_vm0, %v838_v37, %v848_v38 }
 0x608   :  { %v851_v20 = vpack.c.bf16 %v850_v17, %v850_v17 }
 0x60a   :  { %1007 = vmatmul.msk.bf16.vlgmr.msrb.gmra.mxu1 %vm778_vm14, %v851_v20 }
 0x687   :  { %v874_v42 = vpop.f32.mrf.mxu1 }
 0x688   :  { %v875_v24 = vadd.f32 %v874_v42, %v860_v41 }
 0x68a   :  { %v878_v26 = vmax.f32 %v875_v24, 0.0 }
 0x68c   :  { %v881_v30 = vpack.c.bf16 %v878_v26, %v878_v26 }
 0x68e   :  { %1012 = vmatmul.msk.bf16.vlgmr.msrb.gmra.mxu2 %vm290_vm12, %v881_v30 }
 0x68f   :  { %v876_v44 = vpop.f32.mrf.mxu1 }
 0x711   :  { %v902_v45 = vpop.f32.mrf.mxu2 }
 0x712   :  { %v903_v46 = vadd.f32 %v1166_v43, %v902_v45 }
 0x714   :  { %v1013_v48 = vmul.f32 -1.442695, %v903_v46 }
 0x716   :  { %1169 = vpow2.f32 %v1013_v48 }
 0x719   :  { %v904_v49 = vpop.f32.mrf.mxu2 }
 0x71c   :  { %v1170_v40 = vpop.eup %1169 }
 0x71d   :  { %v909_v52 = vadd.f32 1.0, %v1170_v40 }
 0x71f   :  { %1171 = vrcp.f32 %v909_v52  ;;  %v921_v56 = vand.u32 2147483648, %v909_v52  ;;  %v919_v47 = vand.u32 2147483647, %v909_v52  ;;  %vm915_vm2 = vweird.f32 %v909_v52 }
 0x721   :  { %v922_v63 = vor.u32 1.1754944e-38, %v921_v56  ;;  %vm920_vm4 = vcmp.eq.f32.partialorder %v919_v47, 8.507059e+37 }
 0x725   :  { %v1172_v53 = vpop.eup %1171 }
 0x726   :  { %v911_v54 = vmul.f32 %v1172_v53, %v909_v52  ;;  %vm916_vm1 = vweird.f32 %v1172_v53 }
 0x727   :  { %vm917_vm3 = vmor %vm915_vm2, %vm916_vm1 }
 0x728   :  { %v912_v34 = vsub.f32 1.0, %v911_v54 }
 0x72a   :  { %v913_v60 = vmul.f32 %v1172_v53, %v912_v34 }
 0x72c   :  { %v914_v61 = vadd.f32 %v1172_v53, %v913_v60 }
 0x72e   :  { %v918_v1 = vsel %vm917_vm3, %v1172_v53, %v914_v61 }
 0x72f   :  { %v923_v2 = vsel %vm920_vm4, %v922_v63, %v918_v1 }
 0x730   :  { %v925_v51 = vperm.slane %v923_v2, 0  ;;  %v930_v57 = vperm.slane %v923_v2, 1 }
 0x732   :  { %v943_v58 = vmul.f32 %v925_v51, %v1589_v59  ;;  %v944_v3 = vmul.f32 %v925_v51, %v1591_v39  ;;  %v945_v0 = vmul.f32 %v930_v57, %v820_v7  ;;  %v946_v8 = vmul.f32 %v930_v57, %v821_v4 }
 0x734   :  { %v947_v19 = vadd.f32 %v943_v58, %v1256_v11  ;;  %v948_v5 = vadd.f32 %v944_v3, %v1262_v21  ;;  %v949_v55 = vadd.f32 %v945_v0, %v1259_v16  ;;  %v950_v62 = vadd.f32 %v946_v8, %v1271_v31 }
 0x736   :  { %951 = vst.msk [vmem:[#allocation2] sm:$0xff] %vm778_vm14, %v947_v19 }
 0x737   :  { %952 = vst.msk [vmem:[#allocation2 + $0x8] sm:$0xff] %vm778_vm14, %v948_v5 }
 0x738   :  { %953 = vst.msk [vmem:[#allocation2 + $0x10] sm:$0xff] %vm778_vm14, %v949_v55 }
 0x739   :  { %954 = vst.msk [vmem:[#allocation2 + $0x18] sm:$0xff] %vm778_vm14, %v950_v62 }
 0x73a   :  { %967 = dma.vmem_to_hbm [thread:$0]  %s960_s29, 512, %s962_s5, [#allocation3], %s1214_s6, %s1214_s6, %s1210_s17  }
 0x73b   :  { %1197 = dma.done.wait [#allocation3], 512  }
 0x73c   :  { %1198 = vsyncadd [#allocation3], 4294966784 }
 0x73d   :  { %972 = vsyncpa [#allocation3], 1 }

</bundles_post_ra>
